<compile_context>
chip_gen: v7x
topology: tpu7x:2x2x1
jax: 0.10.0
libtpu: 0.0.40
codegen_flags: <defaults>
</compile_context>

<pallas_src>
import jax
import jax.numpy as jnp
from jax.experimental import pallas as pl
from jax.experimental.pallas import tpu as pltpu


COMBINED_DIM = 1024   # combined_dim in the module
OUTPUT_DIM = 4        # output_dim in the module
OUT_PAD = 128         # lane-dense padding for the out_layer store


def _mult_head_kernel(x_ref, w1_ref, b1_ref, w2_ref, b2_ref, w3_ref, b3_ref,
                      o_ref, acc_ref):
    """Fused proj1 -> ReLU -> (dropout: eval no-op) -> proj2 -> out_layer.

    Grid = (batch_tiles, hidden_tiles).  Per hidden tile j:
        h_j  = relu(x @ W1[:, j]) + b1[j]        (bf16 MXU, f32 accum)
        acc += h_j @ W2[j, :]                    (f32 VMEM accumulator)
    On the last tile:  out = (acc + b2) @ W3 + b3  (lane-padded store).
    """
    j = pl.program_id(1)

    @pl.when(j == 0)
    def _():
        acc_ref[...] = jnp.zeros_like(acc_ref)

    # proj1 column-tile + ReLU.
    h = jnp.dot(x_ref[...], w1_ref[...], preferred_element_type=jnp.float32)
    h = jnp.maximum(h + b1_ref[...], 0.0)
    # TODO(synk): F.dropout(training=True) has no deterministic equivalent
    # here; eval-mode dropout is the identity, which is what we implement.

    # proj2 partial product, accumulated across hidden tiles in f32.
    acc_ref[...] += jnp.dot(h.astype(w2_ref.dtype), w2_ref[...],
                            preferred_element_type=jnp.float32)

    @pl.when(j == pl.num_programs(1) - 1)
    def _():
        h2 = acc_ref[...] + b2_ref[...]
        o_ref[...] = (jnp.dot(h2.astype(w3_ref.dtype), w3_ref[...],
                              preferred_element_type=jnp.float32)
                      + b3_ref[...])


def mult_head(x_cls, w1, b1, w2, b2, w3, b3, *, tk=256, bm_max=256):
    """x_cls: [B, 1024] CLS hidden states -> logits [B, 4]."""
    B, D = x_cls.shape
    O = w3.shape[1]

    # Pad batch to a multiple of 8 (sublane granularity) and pick a row tile.
    B_pad = max(8, ((B + 7) // 8) * 8)
    bm = min(bm_max, B_pad)
    B_pad = ((B_pad + bm - 1) // bm) * bm
    if B_pad != B:
        x_cls = jnp.pad(x_cls, ((0, B_pad - B), (0, 0)))

    # bf16 weight / activation stream (f32 accumulation happens in-kernel).
    x_bf = x_cls.astype(jnp.bfloat16)
    w1_bf = w1.astype(jnp.bfloat16)
    w2_bf = w2.astype(jnp.bfloat16)
    # Pad out_layer to a lane-dense 128-wide store; wrapper slices back to O.
    w3_bf = jnp.pad(w3, ((0, 0), (0, OUT_PAD - O))).astype(jnp.bfloat16)
    b3_p = jnp.pad(b3, ((0, 0), (0, OUT_PAD - O)))

    grid = (B_pad // bm, D // tk)
    out = pl.pallas_call(
        _mult_head_kernel,
        out_shape=jax.ShapeDtypeStruct((B_pad, OUT_PAD), jnp.float32),
        grid_spec=pltpu.PrefetchScalarGridSpec(
            num_scalar_prefetch=0,
            grid=grid,
            in_specs=[
                pl.BlockSpec((bm, D), lambda i, j: (i, 0)),        # x (resident)
                pl.BlockSpec((D, tk), lambda i, j: (0, j)),        # W1 col tile
                pl.BlockSpec((1, tk), lambda i, j: (0, j)),        # b1 tile
                pl.BlockSpec((tk, D), lambda i, j: (j, 0)),        # W2 row tile
                pl.BlockSpec((1, D), lambda i, j: (0, 0)),         # b2
                pl.BlockSpec((D, OUT_PAD), lambda i, j: (0, 0)),   # W3 (padded)
                pl.BlockSpec((1, OUT_PAD), lambda i, j: (0, 0)),   # b3 (padded)
            ],
            out_specs=pl.BlockSpec((bm, OUT_PAD), lambda i, j: (i, 0)),
            scratch_shapes=[pltpu.VMEM((bm, D), jnp.float32)],
        ),
        compiler_params=pltpu.CompilerParams(
            dimension_semantics=("parallel", "arbitrary"),
            vmem_limit_bytes=16 << 20,
        ),
    )(x_bf, w1_bf, b1, w2_bf, b2, w3_bf, b3_p)
    return out[:B, :O]


def synthetic_text_encoder(x_l, x_l_mask, emb_table):
    """Deterministic stand-in for RobertaModel: embedding lookup + mask.

    Returns last_hidden_state [B, S, D]; the caller takes [:, 0, :] (CLS),
    mirroring `text_outputs[0][:, 0, :]` in the PyTorch forward.
    """
    # TODO(synk): RoBERTa-large encoder (pretrained checkpoint) has no
    # self-contained Pallas equivalent; replaced with a synthetic embedding.
    hidden = emb_table[x_l]                               # [B, S, D]
    hidden = hidden * x_l_mask[..., None].astype(hidden.dtype)
    return hidden


def reference_head(x_cls, w1, b1, w2, b2, w3, b3):
    """Pure-JAX reference with the same bf16-weight / f32-accum numerics."""
    xb = x_cls.astype(jnp.bfloat16)
    h = jnp.dot(xb, w1.astype(jnp.bfloat16),
                preferred_element_type=jnp.float32) + b1
    h = jnp.maximum(h, 0.0)
    h = jnp.dot(h.astype(jnp.bfloat16), w2.astype(jnp.bfloat16),
                preferred_element_type=jnp.float32) + b2
    return jnp.dot(h.astype(jnp.bfloat16), w3.astype(jnp.bfloat16),
                   preferred_element_type=jnp.float32) + b3


if __name__ == "__main__":
    key = jax.random.PRNGKey(0)
    k_emb, k_ids, k_w1, k_b1, k_w2, k_b2, k_w3, k_b3 = jax.random.split(key, 8)

    B, S, D, O = 8, 16, COMBINED_DIM, OUTPUT_DIM
    VOCAB = 64

    # Token ids and attention mask, as in forward(x_l, x_l_mask).
    x_l = jax.random.randint(k_ids, (B, S), 0, VOCAB, dtype=jnp.int32)
    x_l_mask = jnp.ones((B, S), dtype=jnp.int32)

    # Synthetic (deterministic) parameters.
    emb_table = jax.random.normal(k_emb, (VOCAB, D), jnp.float32) * 0.02
    w1 = jax.random.normal(k_w1, (D, D), jnp.float32) * (1.0 / D ** 0.5)
    b1 = jax.random.normal(k_b1, (1, D), jnp.float32) * 0.01
    w2 = jax.random.normal(k_w2, (D, D), jnp.float32) * (1.0 / D ** 0.5)
    b2 = jax.random.normal(k_b2, (1, D), jnp.float32) * 0.01
    w3 = jax.random.normal(k_w3, (D, O), jnp.float32) * (1.0 / D ** 0.5)
    b3 = jax.random.normal(k_b3, (1, O), jnp.float32) * 0.01

    # --- forward pass ---
    last_hidden = synthetic_text_encoder(x_l, x_l_mask, emb_table)  # [B,S,D]
    last_h_t = last_hidden[:, 0, :]   # CLS, [B,D]; keepdims-safe (no squeeze)

    out = mult_head(last_h_t, w1, b1, w2, b2, w3, b3)               # [B, 4]
    out = jax.block_until_ready(out)

    ref = reference_head(last_h_t, w1, b1, w2, b2, w3, b3)
    assert out.shape == (B, O), out.shape
    assert jnp.allclose(out, ref, atol=1e-2, rtol=1e-2), "mismatch vs reference"

    print("KERNEL_OK")
</pallas_src>

<mosaic_0001>
module attributes {stable_mosaic.version = 11 : i64} {
  func.func @_mult_head_kernel(%arg0: i32, %arg1: i32, %arg2: memref<8x1024xbf16, #tpu.memory_space<vmem>>, %arg3: memref<1024x256xbf16, #tpu.memory_space<vmem>>, %arg4: memref<1x256xf32, #tpu.memory_space<vmem>>, %arg5: memref<256x1024xbf16, #tpu.memory_space<vmem>>, %arg6: memref<1x1024xf32, #tpu.memory_space<vmem>>, %arg7: memref<1024x128xbf16, #tpu.memory_space<vmem>>, %arg8: memref<1x128xf32, #tpu.memory_space<vmem>>, %arg9: memref<8x128xf32, #tpu.memory_space<vmem>>, %arg10: memref<8x1024xf32, #tpu.memory_space<vmem>>) attributes {dimension_semantics = [#tpu.dimension_semantics<parallel>, #tpu.dimension_semantics<arbitrary>], iteration_bounds = array<i64: 1, 4>, scalar_prefetch = 0 : i64, scratch_operands = 1 : i64, tpu.core_type = #tpu.core_type<tc>, window_params = [{transform_indices = @transform_0, window_bounds = array<i64: 8, 1024>}, {transform_indices = @transform_1, window_bounds = array<i64: 1024, 256>}, {transform_indices = @transform_2, window_bounds = array<i64: 1, 256>}, {transform_indices = @transform_3, window_bounds = array<i64: 256, 1024>}, {pipeline_mode = #tpu.pipeline_mode<synchronous>, transform_indices = @transform_4, window_bounds = array<i64: 1, 1024>}, {pipeline_mode = #tpu.pipeline_mode<synchronous>, transform_indices = @transform_5, window_bounds = array<i64: 1024, 128>}, {pipeline_mode = #tpu.pipeline_mode<synchronous>, transform_indices = @transform_6, window_bounds = array<i64: 1, 128>}, {transform_indices = @transform_7, window_bounds = array<i64: 8, 128>}]} {
    %c0_i32 = arith.constant 0 : i32
    %0 = arith.cmpi eq, %arg1, %c0_i32 : i32
    %1 = arith.extui %0 : i1 to i32
    %c0_i32_0 = arith.constant 0 : i32
    %2 = arith.cmpi ne, %1, %c0_i32_0 : i32
    scf.if %2 {
      %cst_15 = arith.constant 0.000000e+00 : f32
      %20 = vector.broadcast %cst_15 : f32 to vector<8x1024xf32>
      %c0_16 = arith.constant 0 : index
      %c0_17 = arith.constant 0 : index
      %21 = vector.load %arg10[%c0_16, %c0_17] : memref<8x1024xf32, #tpu.memory_space<vmem>>, vector<8x1024xf32>
      tpu.vector_store %arg10[%c0_16, %c0_17], %20 {strides = array<i32>} : memref<8x1024xf32, #tpu.memory_space<vmem>>, vector<8x1024xf32>,
    } else {
    }
    %c0 = arith.constant 0 : index
    %c0_1 = arith.constant 0 : index
    %3 = vector.load %arg2[%c0, %c0_1] : memref<8x1024xbf16, #tpu.memory_space<vmem>>, vector<8x1024xbf16>
    %c0_2 = arith.constant 0 : index
    %c0_3 = arith.constant 0 : index
    %4 = vector.load %arg3[%c0_2, %c0_3] : memref<1024x256xbf16, #tpu.memory_space<vmem>>, vector<1024x256xbf16>
    %cst = arith.constant dense<0.000000e+00> : vector<8x256xf32>
    %5 = tpu.matmul %3, %4, %cst {dimension_numbers = #tpu.dot_dimension_numbers<[1], [0], [0], [1], [0, 0, 1, 1], [], []>} : vector<8x1024xbf16>, vector<1024x256xbf16>, vector<8x256xf32> -> vector<8x256xf32>
    %c0_4 = arith.constant 0 : index
    %c0_5 = arith.constant 0 : index
    %6 = vector.load %arg4[%c0_4, %c0_5] : memref<1x256xf32, #tpu.memory_space<vmem>>, vector<1x256xf32>
    %7 = vector.broadcast %6 : vector<1x256xf32> to vector<8x256xf32>
    %8 = arith.addf %5, %7 : vector<8x256xf32>
    %cst_6 = arith.constant 0.000000e+00 : f32
    %9 = vector.broadcast %cst_6 : f32 to vector<8x256xf32>
    %10 = arith.maximumf %8, %9 : vector<8x256xf32>
    %c0_7 = arith.constant 0 : index
    %c0_8 = arith.constant 0 : index
    %11 = vector.load %arg10[%c0_7, %c0_8] : memref<8x1024xf32, #tpu.memory_space<vmem>>, vector<8x1024xf32>
    %12 = arith.truncf %10 : vector<8x256xf32> to vector<8x256xbf16>
    %c0_9 = arith.constant 0 : index
    %c0_10 = arith.constant 0 : index
    %13 = vector.load %arg5[%c0_9, %c0_10] : memref<256x1024xbf16, #tpu.memory_space<vmem>>, vector<256x1024xbf16>
    %cst_11 = arith.constant dense<0.000000e+00> : vector<8x1024xf32>
    %14 = tpu.matmul %12, %13, %cst_11 {dimension_numbers = #tpu.dot_dimension_numbers<[1], [0], [0], [1], [0, 0, 1, 1], [], []>} : vector<8x256xbf16>, vector<256x1024xbf16>, vector<8x1024xf32> -> vector<8x1024xf32>
    %15 = arith.addf %11, %14 : vector<8x1024xf32>
    %c0_12 = arith.constant 0 : index
    %c0_13 = arith.constant 0 : index
    %16 = vector.load %arg10[%c0_12, %c0_13] : memref<8x1024xf32, #tpu.memory_space<vmem>>, vector<8x1024xf32>
    tpu.vector_store %arg10[%c0_12, %c0_13], %15 {strides = array<i32>} : memref<8x1024xf32, #tpu.memory_space<vmem>>, vector<8x1024xf32>,
    %c3_i32 = arith.constant 3 : i32
    %17 = arith.cmpi eq, %arg1, %c3_i32 : i32
    %18 = arith.extui %17 : i1 to i32
    %c0_i32_14 = arith.constant 0 : i32
    %19 = arith.cmpi ne, %18, %c0_i32_14 : i32
    scf.if %19 {
      %c0_15 = arith.constant 0 : index
      %c0_16 = arith.constant 0 : index
      %20 = vector.load %arg10[%c0_15, %c0_16] : memref<8x1024xf32, #tpu.memory_space<vmem>>, vector<8x1024xf32>
      %c0_17 = arith.constant 0 : index
      %c0_18 = arith.constant 0 : index
      %21 = vector.load %arg6[%c0_17, %c0_18] : memref<1x1024xf32, #tpu.memory_space<vmem>>, vector<1x1024xf32>
      %22 = vector.broadcast %21 : vector<1x1024xf32> to vector<8x1024xf32>
      %23 = arith.addf %20, %22 : vector<8x1024xf32>
      %24 = arith.truncf %23 : vector<8x1024xf32> to vector<8x1024xbf16>
      %c0_19 = arith.constant 0 : index
      %c0_20 = arith.constant 0 : index
      %25 = vector.load %arg7[%c0_19, %c0_20] : memref<1024x128xbf16, #tpu.memory_space<vmem>>, vector<1024x128xbf16>
      %cst_21 = arith.constant dense<0.000000e+00> : vector<8x128xf32>
      %26 = tpu.matmul %24, %25, %cst_21 {dimension_numbers = #tpu.dot_dimension_numbers<[1], [0], [0], [1], [0, 0, 1, 1], [], []>} : vector<8x1024xbf16>, vector<1024x128xbf16>, vector<8x128xf32> -> vector<8x128xf32>
      %c0_22 = arith.constant 0 : index
      %c0_23 = arith.constant 0 : index
      %27 = vector.load %arg8[%c0_22, %c0_23] : memref<1x128xf32, #tpu.memory_space<vmem>>, vector<1x128xf32>
      %28 = vector.broadcast %27 : vector<1x128xf32> to vector<8x128xf32>
      %29 = arith.addf %26, %28 : vector<8x128xf32>
      %c0_24 = arith.constant 0 : index
      %c0_25 = arith.constant 0 : index
      %30 = vector.load %arg9[%c0_24, %c0_25] : memref<8x128xf32, #tpu.memory_space<vmem>>, vector<8x128xf32>
      tpu.vector_store %arg9[%c0_24, %c0_25], %29 {strides = array<i32>} : memref<8x128xf32, #tpu.memory_space<vmem>>, vector<8x128xf32>,
    } else {
    }
    return
  }
  func.func @transform_0(%arg0: i32, %arg1: i32) -> (i32, i32) {
    %c0_i32 = arith.constant 0 : i32
    %c0_i32_0 = arith.constant 0 : i32
    return %arg0, %c0_i32 : i32, i32
  }
  func.func @transform_1(%arg0: i32, %arg1: i32) -> (i32, i32) {
    %c0_i32 = arith.constant 0 : i32
    %c0_i32_0 = arith.constant 0 : i32
    return %c0_i32, %arg1 : i32, i32
  }
  func.func @transform_2(%arg0: i32, %arg1: i32) -> (i32, i32) {
    %c0_i32 = arith.constant 0 : i32
    %c0_i32_0 = arith.constant 0 : i32
    return %c0_i32, %arg1 : i32, i32
  }
  func.func @transform_3(%arg0: i32, %arg1: i32) -> (i32, i32) {
    %c0_i32 = arith.constant 0 : i32
    %c0_i32_0 = arith.constant 0 : i32
    return %arg1, %c0_i32 : i32, i32
  }
  func.func @transform_4(%arg0: i32, %arg1: i32) -> (i32, i32) {
    %c0_i32 = arith.constant 0 : i32
    %c0_i32_0 = arith.constant 0 : i32
    %c0_i32_1 = arith.constant 0 : i32
    return %c0_i32, %c0_i32_0 : i32, i32
  }
  func.func @transform_5(%arg0: i32, %arg1: i32) -> (i32, i32) {
    %c0_i32 = arith.constant 0 : i32
    %c0_i32_0 = arith.constant 0 : i32
    %c0_i32_1 = arith.constant 0 : i32
    return %c0_i32, %c0_i32_0 : i32, i32
  }
  func.func @transform_6(%arg0: i32, %arg1: i32) -> (i32, i32) {
    %c0_i32 = arith.constant 0 : i32
    %c0_i32_0 = arith.constant 0 : i32
    %c0_i32_1 = arith.constant 0 : i32
    return %c0_i32, %c0_i32_0 : i32, i32
  }
  func.func @transform_7(%arg0: i32, %arg1: i32) -> (i32, i32) {
    %c0_i32 = arith.constant 0 : i32
    %c0_i32_0 = arith.constant 0 : i32
    return %arg0, %c0_i32 : i32, i32
  }
}

</mosaic_0001>

<bundles_post_ra>
// kernel: tpu_custom_call.1
= control target key start
LH: loop header
LB: loop body
LE: loop exit
PB: predicated region body
PF: predicated region fallthrough
CT: control target
= control target key end

     0   :  { %s5158_s0 = inlined_call_operand.hbm [shape: bf16[8,1024], index: 0, kind: input, shape index: {}]   ;;  %s5159_s1 = inlined_call_operand.hbm [shape: bf16[1024,1024], index: 1, kind: input, shape index: {}]   ;;  %s5160_s2 = inlined_call_operand.hbm [shape: f32[1,1024], index: 2, kind: input, shape index: {}]   ;;  %s5161_s3 = inlined_call_operand.hbm [shape: bf16[1024,1024], index: 3, kind: input, shape index: {}]   ;;  %s5162_s4 = inlined_call_operand.hbm [shape: f32[1,1024], index: 4, kind: input, shape index: {}]   ;;  %s5163_s5 = inlined_call_operand.hbm [shape: bf16[1024,128], index: 5, kind: input, shape index: {}]   ;;  %s5164_s6 = inlined_call_operand.hbm [shape: f32[1,128], index: 6, kind: input, shape index: {}]   ;;  %s5165_s7 = inlined_call_operand.hbm [shape: f32[8,128], index: 7, kind: output, shape index: {}]  }
   0x1   :  { %5184 = sst [smem:[#allocation27_spill]] %s5159_s1 }
   0x2   :  { %5185 = sst [smem:[#allocation28_spill]] %s5162_s4 }
   0x3   :  { %5186 = sst [smem:[#allocation29_spill]] %s5163_s5 }
   0x4   :  { %5187 = sst [smem:[#allocation30_spill]] %s5165_s7 }
   0x5   :  { %12 = vsyncpa [#allocation4], 0 }
   0x6   :  { %13 = vsyncpa [#allocation7], 0 }
   0x7   :  { %15 = vsyncpa [#allocation7 + $0x1], 0 }
   0x8   :  { %16 = vsyncpa [#allocation10], 0 }
   0x9   :  { %18 = vsyncpa [#allocation10 + $0x1], 0 }
   0xa   :  { %19 = vsyncpa [#allocation13], 0 }
   0xb   :  { %20 = vsyncpa [#allocation5], 0  ;;  %s4500_s24 = smov 0   ;;  %s4502_s25 = smov 0  }
   0xc   :  { %s4504_s26 = smov 0   ;;  %s4506_s27 = smov 0  }
   0xd   :  { %s4508_s28 = smov 0   ;;  %s4510_s29 = smov 0  }
   0xe LB: > { %5188 = sst [smem:[#allocation22_spill]] %s4427_s25  ;;  %s4529_s30 = sadd.s32 4294967295, %s4443_s29   ;;  %s4443_s29 = sphi %s4510_s29, %s26_s29   ;;  %s4439_s28 = sphi %s4508_s28, %s5227_s28   ;;  %s4435_s27 = sphi %s4506_s27, %s5226_s27   ;;  %s4431_s26 = sphi %s4504_s26, %s5225_s26   ;;  %s4427_s25 = sphi %s4502_s25, %s5224_s25   ;;  %s4423_s24 = sphi %s4500_s24, %s5221_s24  }
   0xf   : > { %5189 = sst [smem:[#allocation23_spill]] %s4435_s27  ;;  %p84_p0 = scmp.ne.s32.totalorder %s4427_s25, %s4423_s24 }
  0x10   : > { %p5166_p1 = scmp.eq.s32.totalorder %s4529_s30, 0  ;;  %p3296_p2 = scmp.ge.s32.totalorder %s4443_s29, 1 }
  0x11   : > { %p236_p3 = scmp.lt.s32.totalorder %s4443_s29, 5  ;;  %s4445_s10 = smov [#allocation11]  }
  0x12   : > { %p4537_p4 = por %p5166_p1, %p84_p0  ;;  %s263_s11 = sshll.u32 %s4445_s10, 4  ;;  %s264_s11 = int_to_ptr.vmem [resolvable:$true] %s263_s11 }
  0x13   : > { %p4541_p5 = pnand %p3296_p2, %p236_p3  ;;  %s4446_s12 = smov [#allocation12]  }
  0x14   : > { %s5190_s8 = scalar_select %p4537_p4, 1, 0 }
  0x15   : > { %s5192_s9 = scalar_select %p4541_p5, 1, 0 }
  0x16   : > { %5191 = sst [smem:[#allocation24_spill]] %s5190_s8  ;;  %p3787_p6 = pneg %p4541_p5 }
  0x17   : > { %s273_s13 = sshll.u32 %s4446_s12, 4  ;;  %s5194_s4 = sld [smem:[#allocation28_spill]]  ;;  %s4553_s13 = int_to_ptr.vmem [resolvable:$true] %s273_s13 }
  0x18   : > { %p4549_p7 = pnand %p3787_p6, %p5166_p1 }
  0x1a   : > { %s5193_s14 = scalar_select %p4549_p7, 1, 0 }
  0x1b   : > { %p4563_p9 = pneg %p4549_p7 }
  0x1d   : > { %s4145_s17 = scalar_lea.hbm %s5194_s4, 128 }
  0x1e   : > { %p4146_p8 = scmp.ne.s32.totalorder %s5194_s4, %s4145_s17  ;;  %p4152_p12 = scmp.lt.u32.totalorder %s4145_s17, %s5194_s4 }
  0x1f   : > { %s5195_s20 = scalar_select %p4563_p9, 1, 0 }
  0x20   : > { %p4148_p10 = pnand %p4563_p9, %p4146_p8 }
  0x22   : > { %p4149_p11 = pneg %p4148_p10 }
  0x24   : > { %p4154_p13 = pnand %p4152_p12, %p4149_p11 }
  0x26   : > { %4157 = shalt.err (!%p4154_p13)
}
  0x27   : > { %s4158_s23 = scalar_lea.vmem %s264_s11, 128  ;;  %p4166_p6 = scmp.lt.s32.totalorder %s264_s11, %s264_s11 }
  0x28   : > { %p4159_p0 = scmp.ne.s32.totalorder %s264_s11, %s4158_s23  ;;  %p4167_p1 = scmp.lt.s32.totalorder %s4158_s23, %s4158_s23 }
  0x2a   : > { %p4161_p2 = pnand %p4159_p0, %p4563_p9  ;;  %p4168_p4 = por %p4167_p1, %p4166_p6 }
  0x2c   : > { %p4162_p3 = pneg %p4161_p2 }
  0x2e   : > { %p4169_p5 = pnand %p4168_p4, %p4162_p3 }
  0x30   : > { %4172 = shalt.err (!%p4169_p5)
}
  0x31   : > { %3793 = dma.hbm_to_vmem [thread:$0]  (!%p4549_p7), %s5194_s4, 128, %s264_s11, [#allocation10]  }
  0x32   : > { %s5196_s5 = sld [smem:[#allocation29_spill]] }
  0x38   : > { %s4173_s16 = scalar_lea.hbm %s5196_s5, 8192 }
  0x39   : > { %p4174_p8 = scmp.ne.s32.totalorder %s5196_s5, %s4173_s16  ;;  %p4180_p4 = scmp.lt.u32.totalorder %s4173_s16, %s5196_s5 }
  0x3b   : > { %p4176_p10 = pnand %p4174_p8, %p4563_p9 }
  0x3d   : > { %p4177_p1 = pneg %p4176_p10 }
  0x3f   : > { %p4182_p5 = pnand %p4180_p4, %p4177_p1 }
  0x41   : > { %4185 = shalt.err (!%p4182_p5)
}
  0x42   : > { %s4186_s11 = scalar_lea.vmem %s4553_s13, 8192  ;;  %p4194_p0 = scmp.lt.s32.totalorder %s4553_s13, %s4553_s13 }
  0x43   : > { %p4187_p11 = scmp.ne.s32.totalorder %s4553_s13, %s4186_s11  ;;  %p4195_p2 = scmp.lt.s32.totalorder %s4186_s11, %s4186_s11 }
  0x45   : > { %p4189_p12 = pnand %p4187_p11, %p4563_p9  ;;  %p4196_p3 = por %p4195_p2, %p4194_p0 }
  0x47   : > { %p4190_p13 = pneg %p4189_p12 }
  0x49   : > { %p4197_p6 = pnand %p4196_p3, %p4190_p13 }
  0x4b   : > { %4200 = shalt.err (!%p4197_p6)
}
  0x4c   : > { %s4447_s22 = smov 64   ;;  %s4448_s23 = smov 4  }
  0x4d   : > { %3796 = dma.hbm_to_vmem [thread:$0]  (!%p4549_p7), %s5196_s5, 8192, %s4553_s13, [#allocation13], %s4447_s22, %s4447_s22, %s4448_s23  }
  0x4e   : > { %s35_s12 = sadd.s32 1, %s4439_s28  ;;  %s71_s15 = sadd.s32 1, %s4431_s26 }
  0x4f   : > { %p36_p8 = scmp.ge.s32.totalorder %s35_s12, 4  ;;  %p78_p10 = scmp.ne.s32.totalorder %s4431_s26, %s4427_s25 }
  0x50   : > { %p79_p1 = scmp.eq.s32.totalorder %s4443_s29, 0  ;;  %p3814_p4 = scmp.lt.s32.totalorder %s4443_s29, 4 }
  0x51   : > { %s5229_s12 = smov (%p36_p8, %s35_s12), 0  ;;  %s5170_s16 = sand.u32 1, %s4443_s29  }
  0x52   : > { %5197 = sst [smem:[#allocation25_spill]] %s5229_s12  ;;  %p80_p5 = por %p79_p1, %p78_p10 }
  0x53   : > { %s68_s17 = ssub.s32 %s4439_s28, %s5229_s12  ;;  %s5169_s18 = sand.u32 1, %s4431_s26  }
  0x54   : > { %p69_p11 = scmp.eq.s32.totalorder %s68_s17, 0  ;;  %s4616_s19 = sshll.u32 %s5169_s18, 10 }
  0x55   : > { %s3655_s13 = sshll.u32 %s4439_s28, 7  ;;  %s5199_s1 = sld [smem:[#allocation27_spill]] }
  0x56   : > { %s4620_s21 = scalar_select %p69_p11, %s4431_s26, %s71_s15  }
  0x57   : > { %s302_s24 = scalar_lea.vmem [#allocation6], %s4616_s19  ;;  %p4630_p12 = pnand %p3814_p4, %p80_p5 }
  0x58   : > { %5198 = sst [smem:[#allocation26_spill]] %s4620_s21  ;;  %s309_s10 = sshll.u32 %s302_s24, 4  ;;  %s4634_s10 = int_to_ptr.vmem [resolvable:$true] %s309_s10 }
  0x59   : > { %s5200_s17 = scalar_select %p4630_p12, 1, 0 }
  0x5a   : > { %s4638_s15 = scalar_lea.sflag [#allocation7], %s5170_s16  ;;  %p4644_p0 = pneg %p4630_p12 }
  0x5b   : > { %s4625_s23 = scalar_lea.hbm %s5199_s1, %s3655_s13  ;;  %s4206_s18 = scalar_lea.hbm %s5199_s1, 65536 }
  0x5c   : > { %s4201_s11 = scalar_lea.hbm %s4625_s23, 16384  ;;  %p4207_p6 = scmp.lt.u32.totalorder %s4625_s23, %s5199_s1 }
  0x5d   : > { %p4202_p13 = scmp.ne.s32.totalorder %s4625_s23, %s4201_s11  ;;  %p4208_p8 = scmp.lt.u32.totalorder %s4206_s18, %s4201_s11 }
  0x5e   : > { %s5201_s13 = scalar_select %p4644_p0, 1, 0 }
  0x5f   : > { %p4204_p2 = pnand %p4644_p0, %p4202_p13  ;;  %p4209_p10 = por %p4208_p8, %p4207_p6 }
  0x60   : > { %p4210_p1 = scmp.lt.u32.totalorder %s4201_s11, %s4625_s23 }
  0x61   : > { %p4205_p3 = pneg %p4204_p2 }
  0x62   : > { %p4211_p4 = por %p4210_p1, %p4209_p10 }
  0x64   : > { %p4212_p5 = pnand %p4211_p4, %p4205_p3 }
  0x66   : > { %4215 = shalt.err (!%p4212_p5)
}
  0x67   : > { %s4216_s16 = scalar_lea.vmem %s4634_s10, 16384  ;;  %s4449_s22 = smov [#allocation6]  }
  0x68   : > { %p4217_p11 = scmp.ne.s32.totalorder %s4634_s10, %s4216_s16  ;;  %s4221_s24 = sshll.u32 %s4449_s22, 4  ;;  %s4222_s24 = int_to_ptr.vmem [resolvable:$false] %s4221_s24 }
  0x69   : > { %s4223_s4 = scalar_lea.vmem %s4222_s24, 32768  ;;  %p4224_p7 = scmp.lt.s32.totalorder %s4634_s10, %s4222_s24 }
  0x6a   : > { %p4219_p13 = pnand %p4217_p11, %p4644_p0  ;;  %p4225_p9 = scmp.lt.s32.totalorder %s4223_s4, %s4216_s16 }
  0x6c   : > { %p4220_p2 = pneg %p4219_p13  ;;  %p4226_p6 = por %p4225_p9, %p4224_p7 }
  0x6e   : > { %p4227_p8 = pnand %p4226_p6, %p4220_p2 }
  0x70   : > { %4230 = shalt.err (!%p4227_p8)
}
  0x71   : > { %s4450_s5 = smov 512   ;;  %s4451_s18 = smov 128  }
  0x72   : > { %s4452_s11 = smov 8   ;;  %s4453_s1 = smov [#allocation3]  }
  0x73   : > { %3803 = dma.hbm_to_vmem [thread:$0]  (!%p4630_p12), %s4625_s23, 16384, %s4634_s10, %s4638_s15, %s4450_s5, %s4451_s18, %s4452_s11  }
  0x74   : > { %s252_s22 = sshll.u32 %s4453_s1, 4  ;;  %s4454_s12 = smov [#allocation14]   ;;  %s253_s22 = int_to_ptr.vmem [resolvable:$true] %s252_s22 }
  0x75   : > { %s287_s24 = sshll.u32 %s4454_s12, 4  ;;  %s4231_s21 = scalar_lea.hbm %s5158_s0, 512  ;;  %s288_s24 = int_to_ptr.vmem [resolvable:$true] %s287_s24 }
  0x76   : > { %p4232_p7 = scmp.ne.s32.totalorder %s5158_s0, %s4231_s21  ;;  %p5202_p9 = scmp.ne.s32.totalorder %s5195_s20, 0 }
  0x77   : > { %p4238_p1 = scmp.lt.u32.totalorder %s4231_s21, %s5158_s0 }
  0x78   : > { %p4234_p3 = pnand %p4232_p7, %p5202_p9 }
  0x7a   : > { %p4235_p10 = pneg %p4234_p3 }
  0x7c   : > { %p4240_p4 = pnand %p4238_p1, %p4235_p10 }
  0x7e   : > { %4243 = shalt.err (!%p4240_p4)
}
  0x7f   : > { %s4244_s1 = scalar_lea.vmem %s253_s22, 512  ;;  %p4252_p2 = scmp.lt.s32.totalorder %s253_s22, %s253_s22 }
  0x80   : > { %p4245_p5 = scmp.ne.s32.totalorder %s253_s22, %s4244_s1  ;;  %p4253_p6 = scmp.lt.s32.totalorder %s4244_s1, %s4244_s1 }
  0x82   : > { %p4247_p11 = pnand %p4245_p5, %p5202_p9  ;;  %p4254_p8 = por %p4253_p6, %p4252_p2 }
  0x84   : > { %p4248_p13 = pneg %p4247_p11 }
  0x86   : > { %p4255_p12 = pnand %p4254_p8, %p4248_p13 }
  0x88   : > { %4258 = shalt.err (!%p4255_p12)
}
  0x89   : > { %p5203_p7 = scmp.ne.s32.totalorder %s5193_s14, 0  ;;  %s5204_s25 = sand.u32 1, %s4431_s26  }
  0x8a   : > { %s3305_s8 = sshll.u32 %s5204_s25, 1  ;;  %s4259_s23 = scalar_lea.hbm %s5164_s6, 16 }
  0x8b   : > { %3790 = dma.hbm_to_vmem [thread:$0]  (!%p5203_p7), %s5158_s0, 512, %s253_s22, [#allocation4]  }
  0x8c   : > { %p4260_p3 = scmp.ne.s32.totalorder %s5164_s6, %s4259_s23  ;;  %p4266_p1 = scmp.lt.u32.totalorder %s4259_s23, %s5164_s6 }
  0x8e   : > { %p4262_p12 = pnand %p4260_p3, %p5202_p9 }
  0x90   : > { %p4263_p10 = pneg %p4262_p12 }
  0x92   : > { %p4268_p4 = pnand %p4266_p1, %p4263_p10 }
  0x94   : > { %4271 = shalt.err (!%p4268_p4)
}
  0x95   : > { %s4272_s22 = scalar_lea.vmem %s288_s24, 16  ;;  %s4279_s4 = scalar_lea.vmem %s288_s24, 32 }
  0x96   : > { %p4273_p5 = scmp.ne.s32.totalorder %s288_s24, %s4272_s22  ;;  %p4280_p2 = scmp.lt.s32.totalorder %s288_s24, %s288_s24 }
  0x97   : > { %p4281_p6 = scmp.lt.s32.totalorder %s4279_s4, %s4272_s22 }
  0x98   : > { %p4275_p11 = pnand %p4273_p5, %p5202_p9 }
  0x99   : > { %p4282_p8 = por %p4281_p6, %p4280_p2 }
  0x9a   : > { %p4276_p13 = pneg %p4275_p11 }
  0x9c   : > { %p4283_p0 = pnand %p4282_p8, %p4276_p13 }
  0x9e   : > { %4286 = shalt.err (!%p4283_p0)
}
  0x9f   : > { %3799 = dma.hbm_to_vmem [thread:$0]  (!%p5203_p7), %s5164_s6, 16, %s288_s24, [#allocation13]  }
  0xa0   : > { %s3656_s27 = sshll.u32 %s4439_s28, 5  ;;  %s323_s21 = scalar_lea.vmem [#allocation8], %s3305_s8 }
  0xa1   : > { %s4711_s20 = scalar_lea.hbm %s5160_s2, %s3656_s27  ;;  %s331_s23 = sshll.u32 %s323_s21, 4  ;;  %s332_s23 = int_to_ptr.vmem [resolvable:$true] %s331_s23 }
  0xa2   : > { %s4287_s14 = scalar_lea.hbm %s4711_s20, 32  ;;  %p5205_p9 = scmp.ne.s32.totalorder %s5201_s13, 0 }
  0xa3   : > { %p4288_p0 = scmp.ne.s32.totalorder %s4711_s20, %s4287_s14  ;;  %s4292_s18 = scalar_lea.hbm %s5160_s2, 128 }
  0xa4   : > { %p4293_p7 = scmp.lt.u32.totalorder %s4711_s20, %s5160_s2  ;;  %p4294_p10 = scmp.lt.u32.totalorder %s4292_s18, %s4287_s14 }
  0xa5   : > { %p4290_p3 = pnand %p4288_p0, %p5205_p9  ;;  %p4296_p4 = scmp.lt.u32.totalorder %s4287_s14, %s4711_s20 }
  0xa6   : > { %p4295_p1 = por %p4294_p10, %p4293_p7 }
  0xa7   : > { %p4291_p12 = pneg %p4290_p3 }
  0xa8   : > { %p4297_p5 = por %p4296_p4, %p4295_p1 }
  0xaa   : > { %p4298_p11 = pnand %p4297_p5, %p4291_p12 }
  0xac   : > { %4301 = shalt.err (!%p4298_p11)
}
  0xad   : > { %s4302_s8 = scalar_lea.vmem %s332_s23, 32  ;;  %s4455_s22 = smov [#allocation8]  }
  0xae   : > { %p4303_p13 = scmp.ne.s32.totalorder %s332_s23, %s4302_s8  ;;  %s4307_s4 = sshll.u32 %s4455_s22, 4  ;;  %s4308_s4 = int_to_ptr.vmem [resolvable:$false] %s4307_s4 }
  0xaf   : > { %s4309_s1 = scalar_lea.vmem %s4308_s4, 64  ;;  %p4310_p8 = scmp.lt.s32.totalorder %s332_s23, %s4308_s4 }
  0xb0   : > { %p4305_p2 = pnand %p4303_p13, %p5205_p9  ;;  %p4311_p0 = scmp.lt.s32.totalorder %s4309_s1, %s4302_s8 }
  0xb2   : > { %p4306_p6 = pneg %p4305_p2  ;;  %p4312_p3 = por %p4311_p0, %p4310_p8 }
  0xb4   : > { %p4313_p7 = pnand %p4312_p3, %p4306_p6 }
  0xb6   : > { %4316 = shalt.err (!%p4313_p7)
}
  0xb7   : > { %p5206_p10 = scmp.ne.s32.totalorder %s5200_s17, 0  ;;  %s3658_s7 = sshll.u32 %s4439_s28, 14 }
  0xb8   : > { %s4735_s12 = scalar_lea.hbm %s5161_s3, %s3658_s7  ;;  %s342_s21 = scalar_lea.vmem [#allocation9], %s4616_s19 }
  0xb9   : > { %3806 = dma.hbm_to_vmem [thread:$0]  (!%p5206_p10), %s4711_s20, 32, %s332_s23, %s4638_s15  }
  0xba   : > { %s350_s14 = sshll.u32 %s342_s21, 4  ;;  %s5207_s10 = sand.u32 1, %s4443_s29   ;;  %s4738_s14 = int_to_ptr.vmem [resolvable:$true] %s350_s14 }
  0xbb   : > { %s4742_s24 = scalar_lea.sflag [#allocation10], %s5207_s10  ;;  %s4317_s18 = scalar_lea.hbm %s4735_s12, 16384 }
  0xbc   : > { %p4318_p12 = scmp.ne.s32.totalorder %s4735_s12, %s4317_s18  ;;  %s4322_s23 = scalar_lea.hbm %s5161_s3, 65536 }
  0xbd   : > { %p4323_p5 = scmp.lt.u32.totalorder %s4735_s12, %s5161_s3  ;;  %p4324_p11 = scmp.lt.u32.totalorder %s4322_s23, %s4317_s18 }
  0xbe   : > { %p4320_p1 = pnand %p4318_p12, %p5205_p9  ;;  %p4326_p2 = scmp.lt.u32.totalorder %s4317_s18, %s4735_s12 }
  0xbf   : > { %p4325_p13 = por %p4324_p11, %p4323_p5 }
  0xc0   : > { %p4321_p4 = pneg %p4320_p1 }
  0xc1   : > { %p4327_p6 = por %p4326_p2, %p4325_p13 }
  0xc3   : > { %p4328_p8 = pnand %p4327_p6, %p4321_p4 }
  0xc5   : > { %4331 = shalt.err (!%p4328_p8)
}
  0xc6   : > { %s4332_s19 = scalar_lea.vmem %s4738_s14, 16384  ;;  %s4456_s8 = smov [#allocation9]  }
  0xc7   : > { %p4333_p0 = scmp.ne.s32.totalorder %s4738_s14, %s4332_s19  ;;  %s4337_s22 = sshll.u32 %s4456_s8, 4  ;;  %s4338_s22 = int_to_ptr.vmem [resolvable:$false] %s4337_s22 }
  0xc8   : > { %s4339_s4 = scalar_lea.vmem %s4338_s22, 32768  ;;  %p4340_p12 = scmp.lt.s32.totalorder %s4738_s14, %s4338_s22 }
  0xc9   : > { %p4335_p3 = pnand %p4333_p0, %p5205_p9  ;;  %p4341_p1 = scmp.lt.s32.totalorder %s4339_s4, %s4332_s19 }
  0xcb   : > { %p4336_p7 = pneg %p4335_p3  ;;  %p4342_p5 = por %p4341_p1, %p4340_p12 }
  0xcd   : > { %p4343_p11 = pnand %p4342_p5, %p4336_p7 }
  0xcf   : > { %4346 = shalt.err (!%p4343_p11)
}
  0xd0   : > { %s4457_s1 = smov 32   ;;  %p5208_p9 = scmp.ne.s32.totalorder %s5192_s9, 0 }
  0xd1   : > { %3809 = dma.hbm_to_vmem [thread:$0]  (!%p5206_p10), %s4735_s12, 16384, %s4738_s14, %s4742_s24, %s4450_s5, %s4450_s5, %s4457_s1  }
  0xd2   : > { %362 = sbr.rel (%p5208_p9) target bundleno = 1414 (0x586), region = 48  ;;  %p5209_p4 = scmp.eq.s32.totalorder (!%p5208_p9), %s4529_s30, 0 }
  0xd9   : > { %4398 = dma.done.wait (%p5209_p4), [#allocation4], 512   ;;  %p5210_p13 = pmov %p5209_p4 }
  0xda   : > { %s5211_s13 = sld [smem:[#allocation22_spill]]  ;;  %s5212_s7 = sld [smem:[#allocation24_spill]] }
  0xdb   : > { %4400 = vsyncadd (%p5210_p13), [#allocation4], 4294966784  ;;  %s368_s27 = sand.u32 1, %s4529_s30  }
  0xdc   : > { %s369_s21 = scalar_lea.sflag [#allocation7], %s368_s27 }
  0xe0   : > { %s370_s17 = sand.u32 1, %s5211_s13   ;;  %p5213_p2 = scmp.ne.s32.totalorder %s5212_s7, 0 }
  0xe1   : > { %s3314_s25 = sshll.u32 %s370_s17, 10 }
  0xe2   : > { %s4776_s10 = scalar_lea.vmem [#allocation6], %s3314_s25 }
  0xe3   : > { %4402 = dma.done.wait (%p5213_p2), %s369_s21, 16416  }
  0xe4   : > { %4404 = vsyncadd (%p5213_p2), %s369_s21, 4294950880  ;;  %s4782_s9 = sshll.u32 %s370_s17, 1  ;;  %s387_s12 = scalar_lea.sflag [#allocation10], %s368_s27 }
  0xe5   : > { %s381_s5 = scalar_lea.vmem [#allocation8], %s4782_s9  ;;  %s4785_s14 = scalar_lea.vmem [#allocation9], %s3314_s25 }
  0xe6   : > { %4406 = dma.done.wait (%p5213_p2), %s387_s12, 16384  }
  0xe7   : > { %4408 = vsyncadd (%p5213_p2), %s387_s12, 4294950912  ;;  %p5214_p10 = pmov %p5209_p4 }
  0xe8   : > { %p5215_p6 = pmov %p5209_p4 }
  0xe9   : > { %4410 = dma.done.wait (%p5214_p10), [#allocation10], 128  }
  0xea   : > { %4412 = vsyncadd (%p5215_p6), [#allocation10], 4294967168  ;;  %p5216_p8 = pmov %p5209_p4 }
  0xeb   : > { %p5217_p0 = pmov %p5209_p4 }
  0xec   : > { %4414 = dma.done.wait (%p5216_p8), [#allocation13], 8208  }
  0xed   : > { %4416 = vsyncadd (%p5217_p0), [#allocation13], 4294959088  ;;  %s5218_s24 = sld [smem:[#allocation23_spill]] }
  0xf3   : > { %p3320_p3 = scmp.ne.s32.totalorder %s5218_s24, 0 }
  0xf4   : > { %v4458_v0 = vmov (!%p3320_p3), 0.0  }
  0xf5   : > { %445 = sbr.rel (%p3320_p3) target bundleno = 252 (0xfc), region = 80  ;;  %446 = vst [vmem:[#allocation2] sm:$0xff] (!%p3320_p3), %v4458_v0  ;;  %447 = vst [vmem:[#allocation2 + $0x8] sm:$0xff] (!%p3320_p3), %v4458_v0 }
  0xf6   : > { %448 = vst [vmem:[#allocation2 + $0x10] sm:$0xff] (!%p3320_p3), %v4458_v0  ;;  %449 = vst [vmem:[#allocation2 + $0x18] sm:$0xff] (!%p3320_p3), %v4458_v0 }
  0xf7   : > { %450 = vst [vmem:[#allocation2 + $0x20] sm:$0xff] (!%p3320_p3), %v4458_v0  ;;  %451 = vst [vmem:[#allocation2 + $0x28] sm:$0xff] (!%p3320_p3), %v4458_v0 }
  0xf8   : > { %452 = vst [vmem:[#allocation2 + $0x30] sm:$0xff] (!%p3320_p3), %v4458_v0  ;;  %453 = vst [vmem:[#allocation2 + $0x38] sm:$0xff] (!%p3320_p3), %v4458_v0 }
  0xfc PF: > { %v3881_v1 = vld [vmem:[%s4776_s10 + $0x4] ss:$8 sps:$4 sm:$0xff]   ;;  %v3883_v2 = vld [vmem:[%s4776_s10] ss:$8 sps:$4 sm:$0xff]   ;;  %v3884_v3 = vld [vmem:[%s4776_s10 + $0x14] ss:$8 sps:$4 sm:$0xff]  }
  0xfd   : > { %1266 = vmatprep.subr.bf16.mxu0 %v3881_v1  ;;  %v3886_v4 = vld [vmem:[%s4776_s10 + $0x10] ss:$8 sps:$4 sm:$0xff]   ;;  %v3887_v5 = vld [vmem:[%s4776_s10 + $0x24] ss:$8 sps:$4 sm:$0xff]   ;;  %v3889_v6 = vld [vmem:[%s4776_s10 + $0x20] ss:$8 sps:$4 sm:$0xff]  }
  0xfe   : > { %1267 = vmatpush1.bf16.msra.mxu0 %v3883_v2  ;;  %v3890_v7 = vld [vmem:[%s4776_s10 + $0x34] ss:$8 sps:$4 sm:$0xff]   ;;  %v3892_v8 = vld [vmem:[%s4776_s10 + $0x30] ss:$8 sps:$4 sm:$0xff]   ;;  %v3893_v9 = vld [vmem:[%s4776_s10 + $0x44] ss:$8 sps:$4 sm:$0xff]  }
  0xff   : > { %1268 = vmatprep.subr.bf16.mxu0 %v3884_v3  ;;  %v3895_v10 = vld [vmem:[%s4776_s10 + $0x40] ss:$8 sps:$4 sm:$0xff]   ;;  %v3896_v11 = vld [vmem:[%s4776_s10 + $0x54] ss:$8 sps:$4 sm:$0xff]   ;;  %v3898_v12 = vld [vmem:[%s4776_s10 + $0x50] ss:$8 sps:$4 sm:$0xff]  }
 0x100   : > { %v3899_v13 = vld [vmem:[%s4776_s10 + $0x64] ss:$8 sps:$4 sm:$0xff]   ;;  %v3901_v16 = vld [vmem:[%s4776_s10 + $0x60] ss:$8 sps:$4 sm:$0xff]   ;;  %v3902_v17 = vld [vmem:[%s4776_s10 + $0x74] ss:$8 sps:$4 sm:$0xff]  }
 0x101   : > { %v454_v14 = vld [vmem:[#allocation3] sm:$0xff]  ;;  %v3904_v18 = vld [vmem:[%s4776_s10 + $0x70] ss:$8 sps:$4 sm:$0xff]   ;;  %v3908_v21 = vld [vmem:[%s4776_s10 + $0x94] ss:$8 sps:$4 sm:$0xff]   ;;  %s5219_s18 = sld [smem:[#allocation23_spill]] }
 0x102   : > { %1269 = vmatpush1.bf16.msra.mxu0 %v3886_v4  ;;  %v3322_v15 = vcombine.high %v454_v14, %v454_v14  ;;  %v3905_v19 = vld [vmem:[%s4776_s10 + $0x84] ss:$8 sps:$4 sm:$0xff]   ;;  %v3907_v20 = vld [vmem:[%s4776_s10 + $0x80] ss:$8 sps:$4 sm:$0xff]   ;;  %v3910_v22 = vld [vmem:[%s4776_s10 + $0x90] ss:$8 sps:$4 sm:$0xff]   ;;  %v3321_v37 = vcombine.low %v454_v14, %v454_v14 }
 0x103   : > { %1270 = vmatprep.subr.bf16.mxu0 %v3887_v5  ;;  %v3911_v23 = vld [vmem:[%s4776_s10 + $0xa4] ss:$8 sps:$4 sm:$0xff]   ;;  %v3913_v24 = vld [vmem:[%s4776_s10 + $0xa0] ss:$8 sps:$4 sm:$0xff]   ;;  %v3914_v25 = vld [vmem:[%s4776_s10 + $0xb4] ss:$8 sps:$4 sm:$0xff]  }
 0x104   : > { %1298 = vmatprep.mubr.bf16.mxu0 %v3322_v15  ;;  %v3916_v26 = vld [vmem:[%s4776_s10 + $0xb0] ss:$8 sps:$4 sm:$0xff]   ;;  %v3917_v27 = vld [vmem:[%s4776_s10 + $0xc4] ss:$8 sps:$4 sm:$0xff]   ;;  %v3919_v28 = vld [vmem:[%s4776_s10 + $0xc0] ss:$8 sps:$4 sm:$0xff]  }
 0x105   : > { %v3920_v29 = vld [vmem:[%s4776_s10 + $0xd4] ss:$8 sps:$4 sm:$0xff]   ;;  %v3922_v30 = vld [vmem:[%s4776_s10 + $0xd0] ss:$8 sps:$4 sm:$0xff]   ;;  %v3923_v31 = vld [vmem:[%s4776_s10 + $0xe4] ss:$8 sps:$4 sm:$0xff]  }
 0x106   : > { %1271 = vmatpush1.bf16.msra.mxu0 %v3889_v6  ;;  %v3925_v32 = vld [vmem:[%s4776_s10 + $0xe0] ss:$8 sps:$4 sm:$0xff]   ;;  %v3926_v33 = vld [vmem:[%s4776_s10 + $0xf4] ss:$8 sps:$4 sm:$0xff]   ;;  %v3928_v34 = vld [vmem:[%s4776_s10 + $0xf0] ss:$8 sps:$4 sm:$0xff]  }
 0x107   : > { %1272 = vmatprep.subr.bf16.mxu0 %v3890_v7  ;;  %v3933_v35 = vld [vmem:[%s4776_s10 + $0x104] ss:$8 sps:$4 sm:$0xff]   ;;  %v3931_v38 = vld [vmem:[%s4776_s10 + $0x100] ss:$8 sps:$4 sm:$0xff]   ;;  %v3936_v40 = vld [vmem:[%s4776_s10 + $0x114] ss:$8 sps:$4 sm:$0xff]  }
 0x108   : > { %v4833_v36 = vld [vmem:[#allocation3 + $0x8] sm:$0xff]  ;;  %v3934_v41 = vld [vmem:[%s4776_s10 + $0x110] ss:$8 sps:$4 sm:$0xff]   ;;  %v3942_v44 = vld [vmem:[%s4776_s10 + $0x134] ss:$8 sps:$4 sm:$0xff]   ;;  %p3585_p7 = scmp.ne.s32.totalorder %s5219_s18, 3 }
 0x109   : > { %v3324_v39 = vcombine.high %v4833_v36, %v4833_v36  ;;  %v3939_v42 = vld [vmem:[%s4776_s10 + $0x124] ss:$8 sps:$4 sm:$0xff]   ;;  %v3937_v43 = vld [vmem:[%s4776_s10 + $0x120] ss:$8 sps:$4 sm:$0xff]   ;;  %v3940_v45 = vld [vmem:[%s4776_s10 + $0x130] ss:$8 sps:$4 sm:$0xff]  }
 0x10a   : > { %1273 = vmatpush1.bf16.msra.mxu0 %v3892_v8  ;;  %v3945_v46 = vld [vmem:[%s4776_s10 + $0x144] ss:$8 sps:$4 sm:$0xff]   ;;  %v3943_v47 = vld [vmem:[%s4776_s10 + $0x140] ss:$8 sps:$4 sm:$0xff]   ;;  %v3948_v48 = vld [vmem:[%s4776_s10 + $0x154] ss:$8 sps:$4 sm:$0xff]   ;;  %v3323_v8 = vcombine.low %v4833_v36, %v4833_v36 }
 0x10b   : > { %1274 = vmatprep.subr.bf16.mxu0 %v3893_v9  ;;  %v3946_v49 = vld [vmem:[%s4776_s10 + $0x150] ss:$8 sps:$4 sm:$0xff]   ;;  %v3951_v50 = vld [vmem:[%s4776_s10 + $0x164] ss:$8 sps:$4 sm:$0xff]   ;;  %v3949_v51 = vld [vmem:[%s4776_s10 + $0x160] ss:$8 sps:$4 sm:$0xff]  }
 0x10c   : > { %v3954_v52 = vld [vmem:[%s4776_s10 + $0x174] ss:$8 sps:$4 sm:$0xff]   ;;  %v3952_v53 = vld [vmem:[%s4776_s10 + $0x170] ss:$8 sps:$4 sm:$0xff]   ;;  %v3957_v54 = vld [vmem:[%s4776_s10 + $0x184] ss:$8 sps:$4 sm:$0xff]  }
 0x10d   : > { %v3955_v55 = vld [vmem:[%s4776_s10 + $0x180] ss:$8 sps:$4 sm:$0xff]   ;;  %v3960_v56 = vld [vmem:[%s4776_s10 + $0x194] ss:$8 sps:$4 sm:$0xff]   ;;  %v3958_v57 = vld [vmem:[%s4776_s10 + $0x190] ss:$8 sps:$4 sm:$0xff]  }
 0x10e   : > { %1275 = vmatpush1.bf16.msra.mxu0 %v3895_v10  ;;  %v3963_v58 = vld [vmem:[%s4776_s10 + $0x1a4] ss:$8 sps:$4 sm:$0xff]   ;;  %v3961_v59 = vld [vmem:[%s4776_s10 + $0x1a0] ss:$8 sps:$4 sm:$0xff]   ;;  %v3966_v60 = vld [vmem:[%s4776_s10 + $0x1b4] ss:$8 sps:$4 sm:$0xff]  }
 0x10f   : > { %1276 = vmatprep.subr.bf16.mxu0 %v3896_v11  ;;  %v3964_v61 = vld [vmem:[%s4776_s10 + $0x1b0] ss:$8 sps:$4 sm:$0xff]   ;;  %v3969_v62 = vld [vmem:[%s4776_s10 + $0x1c4] ss:$8 sps:$4 sm:$0xff]   ;;  %v3967_v63 = vld [vmem:[%s4776_s10 + $0x1c0] ss:$8 sps:$4 sm:$0xff]  }
 0x110   : > { %v3972_v0 = vld [vmem:[%s4776_s10 + $0x1d4] ss:$8 sps:$4 sm:$0xff]   ;;  %v3970_v1 = vld [vmem:[%s4776_s10 + $0x1d0] ss:$8 sps:$4 sm:$0xff]   ;;  %v3975_v2 = vld [vmem:[%s4776_s10 + $0x1e4] ss:$8 sps:$4 sm:$0xff]  }
 0x111   : > { %v3973_v3 = vld [vmem:[%s4776_s10 + $0x1e0] ss:$8 sps:$4 sm:$0xff]   ;;  %v3978_v4 = vld [vmem:[%s4776_s10 + $0x1f4] ss:$8 sps:$4 sm:$0xff]   ;;  %v3976_v5 = vld [vmem:[%s4776_s10 + $0x1f0] ss:$8 sps:$4 sm:$0xff]  }
 0x112   : > { %1277 = vmatpush1.bf16.msra.mxu0 %v3898_v12  ;;  %v3983_v6 = vld [vmem:[%s4776_s10 + $0x204] ss:$8 sps:$4 sm:$0xff]   ;;  %v4869_v7 = vld [vmem:[#allocation3 + $0x10] sm:$0xff]  ;;  %v3981_v9 = vld [vmem:[%s4776_s10 + $0x200] ss:$8 sps:$4 sm:$0xff]  }
 0x113   : > { %1278 = vmatprep.subr.bf16.mxu0 %v3899_v13  ;;  %v3326_v10 = vcombine.high %v4869_v7, %v4869_v7  ;;  %v3986_v11 = vld [vmem:[%s4776_s10 + $0x214] ss:$8 sps:$4 sm:$0xff]   ;;  %v1442_v12 = vld [vmem:[%s4785_s14] sm:$0xff]  ;;  %v3984_v15 = vld [vmem:[%s4776_s10 + $0x210] ss:$8 sps:$4 sm:$0xff]  }
 0x114   : > { %v1446_v13 = vld [vmem:[%s4785_s14 + $0x20] sm:$0xff] }
 0x115   : > { %v1450_v14 = vld [vmem:[%s4785_s14 + $0x40] sm:$0xff] }
 0x116   : > { %1279 = vmatpush1.bf16.msra.mxu0 %v3901_v16  ;;  %v3458_v16 = vcombine.high %v1442_v12, %v1446_v13  ;;  %v3993_v36 = vld [vmem:[%s4776_s10 + $0x240] ss:$8 sps:$4 sm:$0xff]  }
 0x117   : > { %1280 = vmatprep.subr.bf16.mxu0 %v3902_v17  ;;  %v3457_v17 = vcombine.low %v1442_v12, %v1446_v13  ;;  %v1530_v12 = vld [vmem:[%s4785_s14 + $0x2c0] sm:$0xff] }
 0x118   : > { %2210 = vmatprep.subr.bf16.mxu1 %v3458_v16  ;;  %v1534_v13 = vld [vmem:[%s4785_s14 + $0x2e0] sm:$0xff] }
 0x119   : > { %2211 = vmatpush1.bf16.msra.mxu1 %v3457_v17  ;;  %v3546_v16 = vcombine.high %v1530_v12, %v1534_v13  ;;  %v4019_v17 = vld [vmem:[%s4776_s10 + $0x2c4] ss:$8 sps:$4 sm:$0xff]  }
 0x11a   : > { %1281 = vmatpush1.bf16.msra.mxu0 %v3904_v18  ;;  %v1454_v18 = vld [vmem:[%s4785_s14 + $0x60] sm:$0xff] }
 0x11b   : > { %1282 = vmatprep.subr.bf16.mxu0 %v3905_v19  ;;  %v3989_v19 = vld [vmem:[%s4776_s10 + $0x224] ss:$8 sps:$4 sm:$0xff]  }
 0x11e   : > { %1283 = vmatpush1.bf16.msra.mxu0 %v3907_v20  ;;  %v3466_v20 = vcombine.high %v1450_v14, %v1454_v18 }
 0x11f   : > { %1284 = vmatprep.subr.bf16.mxu0 %v3908_v21  ;;  %v1458_v21 = vld [vmem:[%s4785_s14 + $0x80] sm:$0xff] }
 0x120   : > { %2212 = vmatprep.subr.bf16.mxu1 %v3466_v20  ;;  %v3545_v20 = vcombine.low %v1530_v12, %v1534_v13 }
 0x122   : > { %1285 = vmatpush1.bf16.msra.mxu0 %v3910_v22  ;;  %v1462_v22 = vld [vmem:[%s4785_s14 + $0xa0] sm:$0xff] }
 0x123   : > { %1286 = vmatprep.subr.bf16.mxu0 %v3911_v23  ;;  %v3465_v23 = vcombine.low %v1450_v14, %v1454_v18  ;;  %v1538_v18 = vld [vmem:[%s4785_s14 + $0x300] sm:$0xff] }
 0x125   : > { %2213 = vmatpush1.bf16.msra.mxu1 %v3465_v23  ;;  %v4022_v23 = vld [vmem:[%s4776_s10 + $0x2d4] ss:$8 sps:$4 sm:$0xff]  }
 0x126   : > { %1287 = vmatpush1.bf16.msra.mxu0 %v3913_v24  ;;  %v3987_v24 = vld [vmem:[%s4776_s10 + $0x220] ss:$8 sps:$4 sm:$0xff]  }
 0x127   : > { %1288 = vmatprep.subr.bf16.mxu0 %v3914_v25  ;;  %v3474_v25 = vcombine.high %v1458_v21, %v1462_v22 }
 0x129   : > { %2214 = vmatprep.subr.bf16.mxu1 %v3474_v25  ;;  %v1550_v25 = vld [vmem:[%s4785_s14 + $0x360] sm:$0xff] }
 0x12a   : > { %1289 = vmatpush1.bf16.msra.mxu0 %v3916_v26  ;;  %v3992_v26 = vld [vmem:[%s4776_s10 + $0x234] ss:$8 sps:$4 sm:$0xff]  }
 0x12b   : > { %1290 = vmatprep.subr.bf16.mxu0 %v3917_v27  ;;  %v1466_v27 = vld [vmem:[%s4785_s14 + $0xc0] sm:$0xff] }
 0x12e   : > { %1291 = vmatpush1.bf16.msra.mxu0 %v3919_v28  ;;  %v1470_v28 = vld [vmem:[%s4785_s14 + $0xe0] sm:$0xff] }
 0x12f   : > { %1292 = vmatprep.subr.bf16.mxu0 %v3920_v29  ;;  %v3473_v29 = vcombine.low %v1458_v21, %v1462_v22  ;;  %v4017_v21 = vld [vmem:[%s4776_s10 + $0x2c0] ss:$8 sps:$4 sm:$0xff]  }
 0x131   : > { %2215 = vmatpush1.bf16.msra.mxu1 %v3473_v29  ;;  %v4025_v29 = vld [vmem:[%s4776_s10 + $0x2e4] ss:$8 sps:$4 sm:$0xff]  }
 0x132   : > { %1293 = vmatpush1.bf16.msra.mxu0 %v3922_v30  ;;  %v3990_v30 = vld [vmem:[%s4776_s10 + $0x230] ss:$8 sps:$4 sm:$0xff]  }
 0x133   : > { %1294 = vmatprep.subr.bf16.mxu0 %v3923_v31  ;;  %v3482_v31 = vcombine.high %v1466_v27, %v1470_v28 }
 0x135   : > { %2216 = vmatprep.subr.bf16.mxu1 %v3482_v31  ;;  %v4023_v31 = vld [vmem:[%s4776_s10 + $0x2e0] ss:$8 sps:$4 sm:$0xff]  }
 0x136   : > { %1295 = vmatpush1.bf16.msra.mxu0 %v3925_v32  ;;  %v3995_v32 = vld [vmem:[%s4776_s10 + $0x244] ss:$8 sps:$4 sm:$0xff]  }
 0x137   : > { %1296 = vmatprep.subr.bf16.mxu0 %v3926_v33  ;;  %v1474_v33 = vld [vmem:[%s4785_s14 + $0x100] sm:$0xff] }
 0x13a   : > { %1297 = vmatpush1.bf16.msra.mxu0 %v3928_v34  ;;  %v1478_v34 = vld [vmem:[%s4785_s14 + $0x120] sm:$0xff] }
 0x13b   : > { %1307 = vmatprep.subr.bf16.mxu0 %v3933_v35  ;;  %v3481_v35 = vcombine.low %v1466_v27, %v1470_v28  ;;  %v4020_v27 = vld [vmem:[%s4776_s10 + $0x2d0] ss:$8 sps:$4 sm:$0xff]  }
 0x13d   : > { %1299 = vmatmul.mubr.bf16.vlgmr.msra.gmra.mrb[0].mxu0 %v3321_v37  ;;  %v3490_v37 = vcombine.high %v1474_v33, %v1478_v34  ;;  %2217 = vmatpush1.bf16.msra.mxu1 %v3481_v35  ;;  %v4935_v35 = vld [vmem:[#allocation3 + $0x18] sm:$0xff] }
 0x13e   : > { %1308 = vmatpush1.bf16.msra.mxu0 %v3931_v38  ;;  %1339 = vmatprep.mubr.bf16.mxu0 %v3324_v39  ;;  %v3998_v38 = vld [vmem:[%s4776_s10 + $0x254] ss:$8 sps:$4 sm:$0xff]   ;;  %v1482_v39 = vld [vmem:[%s4785_s14 + $0x140] sm:$0xff] }
 0x13f   : > { %1309 = vmatprep.subr.bf16.mxu0 %v3936_v40  ;;  %v1486_v40 = vld [vmem:[%s4785_s14 + $0x160] sm:$0xff]  ;;  %2218 = vmatprep.subr.bf16.mxu1 %v3490_v37 }
 0x140   : > { %v4031_v37 = vld [vmem:[%s4776_s10 + $0x300] ss:$8 sps:$4 sm:$0xff]  }
 0x142   : > { %1310 = vmatpush1.bf16.msra.mxu0 %v3934_v41  ;;  %v3489_v41 = vcombine.low %v1474_v33, %v1478_v34  ;;  %v4026_v33 = vld [vmem:[%s4776_s10 + $0x2f0] ss:$8 sps:$4 sm:$0xff]   ;;  %v4033_v34 = vld [vmem:[%s4776_s10 + $0x304] ss:$8 sps:$4 sm:$0xff]  }
 0x143   : > { %1311 = vmatprep.subr.bf16.mxu0 %v3939_v42  ;;  %v3996_v42 = vld [vmem:[%s4776_s10 + $0x250] ss:$8 sps:$4 sm:$0xff]  }
 0x144   : > { %2219 = vmatpush1.bf16.msra.mxu1 %v3489_v41  ;;  %v4039_v41 = vld [vmem:[%s4776_s10 + $0x324] ss:$8 sps:$4 sm:$0xff]  }
 0x146   : > { %1312 = vmatpush1.bf16.msra.mxu0 %v3937_v43  ;;  %v3498_v43 = vcombine.high %v1482_v39, %v1486_v40 }
 0x147   : > { %1313 = vmatprep.subr.bf16.mxu0 %v3942_v44  ;;  %v4001_v44 = vld [vmem:[%s4776_s10 + $0x264] ss:$8 sps:$4 sm:$0xff]  }
 0x148   : > { %2220 = vmatprep.subr.bf16.mxu1 %v3498_v43  ;;  %v4040_v43 = vld [vmem:[%s4776_s10 + $0x330] ss:$8 sps:$4 sm:$0xff]  }
 0x14a   : > { %1314 = vmatpush1.bf16.msra.mxu0 %v3940_v45  ;;  %v1490_v45 = vld [vmem:[%s4785_s14 + $0x180] sm:$0xff] }
 0x14b   : > { %1315 = vmatprep.subr.bf16.mxu0 %v3945_v46  ;;  %v1494_v46 = vld [vmem:[%s4785_s14 + $0x1a0] sm:$0xff] }
 0x14e   : > { %1316 = vmatpush1.bf16.msra.mxu0 %v3943_v47  ;;  %v3497_v47 = vcombine.low %v1482_v39, %v1486_v40  ;;  %v4036_v39 = vld [vmem:[%s4776_s10 + $0x314] ss:$8 sps:$4 sm:$0xff]   ;;  %v4034_v40 = vld [vmem:[%s4776_s10 + $0x310] ss:$8 sps:$4 sm:$0xff]  }
 0x14f   : > { %1317 = vmatprep.subr.bf16.mxu0 %v3948_v48  ;;  %v3999_v48 = vld [vmem:[%s4776_s10 + $0x260] ss:$8 sps:$4 sm:$0xff]  }
 0x150   : > { %2221 = vmatpush1.bf16.msra.mxu1 %v3497_v47  ;;  %v4046_v47 = vld [vmem:[%s4776_s10 + $0x350] ss:$8 sps:$4 sm:$0xff]  }
 0x152   : > { %1318 = vmatpush1.bf16.msra.mxu0 %v3946_v49  ;;  %v3506_v49 = vcombine.high %v1490_v45, %v1494_v46 }
 0x153   : > { %1319 = vmatprep.subr.bf16.mxu0 %v3951_v50  ;;  %v4004_v50 = vld [vmem:[%s4776_s10 + $0x274] ss:$8 sps:$4 sm:$0xff]  }
 0x154   : > { %2222 = vmatprep.subr.bf16.mxu1 %v3506_v49  ;;  %v4049_v49 = vld [vmem:[%s4776_s10 + $0x360] ss:$8 sps:$4 sm:$0xff]  }
 0x156   : > { %1320 = vmatpush1.bf16.msra.mxu0 %v3949_v51  ;;  %v1498_v51 = vld [vmem:[%s4785_s14 + $0x1c0] sm:$0xff] }
 0x157   : > { %1321 = vmatprep.subr.bf16.mxu0 %v3954_v52  ;;  %v1502_v52 = vld [vmem:[%s4785_s14 + $0x1e0] sm:$0xff] }
 0x15a   : > { %1322 = vmatpush1.bf16.msra.mxu0 %v3952_v53  ;;  %v3505_v53 = vcombine.low %v1490_v45, %v1494_v46  ;;  %v4043_v45 = vld [vmem:[%s4776_s10 + $0x340] ss:$8 sps:$4 sm:$0xff]   ;;  %v4048_v46 = vld [vmem:[%s4776_s10 + $0x354] ss:$8 sps:$4 sm:$0xff]  }
 0x15b   : > { %1323 = vmatprep.subr.bf16.mxu0 %v3957_v54  ;;  %v4002_v54 = vld [vmem:[%s4776_s10 + $0x270] ss:$8 sps:$4 sm:$0xff]  }
 0x15c   : > { %2223 = vmatpush1.bf16.msra.mxu1 %v3505_v53  ;;  %v4055_v53 = vld [vmem:[%s4776_s10 + $0x380] ss:$8 sps:$4 sm:$0xff]  }
 0x15e   : > { %1324 = vmatpush1.bf16.msra.mxu0 %v3955_v55  ;;  %v3514_v55 = vcombine.high %v1498_v51, %v1502_v52 }
 0x15f   : > { %1325 = vmatprep.subr.bf16.mxu0 %v3960_v56  ;;  %v4007_v56 = vld [vmem:[%s4776_s10 + $0x284] ss:$8 sps:$4 sm:$0xff]  }
 0x160   : > { %2224 = vmatprep.subr.bf16.mxu1 %v3514_v55  ;;  %v4058_v55 = vld [vmem:[%s4776_s10 + $0x390] ss:$8 sps:$4 sm:$0xff]  }
 0x162   : > { %1326 = vmatpush1.bf16.msra.mxu0 %v3958_v57  ;;  %v1506_v57 = vld [vmem:[%s4785_s14 + $0x200] sm:$0xff] }
 0x163   : > { %1327 = vmatprep.subr.bf16.mxu0 %v3963_v58  ;;  %v1510_v58 = vld [vmem:[%s4785_s14 + $0x220] sm:$0xff] }
 0x166   : > { %1328 = vmatpush1.bf16.msra.mxu0 %v3961_v59  ;;  %v3513_v59 = vcombine.low %v1498_v51, %v1502_v52  ;;  %v4052_v51 = vld [vmem:[%s4776_s10 + $0x370] ss:$8 sps:$4 sm:$0xff]   ;;  %v4057_v52 = vld [vmem:[%s4776_s10 + $0x384] ss:$8 sps:$4 sm:$0xff]  }
 0x167   : > { %1329 = vmatprep.subr.bf16.mxu0 %v3966_v60  ;;  %v4005_v60 = vld [vmem:[%s4776_s10 + $0x280] ss:$8 sps:$4 sm:$0xff]  }
 0x168   : > { %2225 = vmatpush1.bf16.msra.mxu1 %v3513_v59  ;;  %v4064_v59 = vld [vmem:[%s4776_s10 + $0x3b0] ss:$8 sps:$4 sm:$0xff]  }
 0x16a   : > { %1330 = vmatpush1.bf16.msra.mxu0 %v3964_v61  ;;  %v3522_v61 = vcombine.high %v1506_v57, %v1510_v58 }
 0x16b   : > { %1331 = vmatprep.subr.bf16.mxu0 %v3969_v62  ;;  %v4010_v62 = vld [vmem:[%s4776_s10 + $0x294] ss:$8 sps:$4 sm:$0xff]  }
 0x16c   : > { %2226 = vmatprep.subr.bf16.mxu1 %v3522_v61  ;;  %v4067_v61 = vld [vmem:[%s4776_s10 + $0x3c0] ss:$8 sps:$4 sm:$0xff]  }
 0x16e   : > { %1332 = vmatpush1.bf16.msra.mxu0 %v3967_v63  ;;  %v1514_v63 = vld [vmem:[%s4785_s14 + $0x240] sm:$0xff] }
 0x16f   : > { %1333 = vmatprep.subr.bf16.mxu0 %v3972_v0  ;;  %v1518_v0 = vld [vmem:[%s4785_s14 + $0x260] sm:$0xff] }
 0x172   : > { %1334 = vmatpush1.bf16.msra.mxu0 %v3970_v1  ;;  %v3521_v1 = vcombine.low %v1506_v57, %v1510_v58  ;;  %v4061_v57 = vld [vmem:[%s4776_s10 + $0x3a0] ss:$8 sps:$4 sm:$0xff]   ;;  %v4066_v58 = vld [vmem:[%s4776_s10 + $0x3b4] ss:$8 sps:$4 sm:$0xff]  }
 0x173   : > { %1335 = vmatprep.subr.bf16.mxu0 %v3975_v2  ;;  %v4008_v2 = vld [vmem:[%s4776_s10 + $0x290] ss:$8 sps:$4 sm:$0xff]  }
 0x174   : > { %2227 = vmatpush1.bf16.msra.mxu1 %v3521_v1  ;;  %v4073_v1 = vld [vmem:[%s4776_s10 + $0x3e0] ss:$8 sps:$4 sm:$0xff]  }
 0x176   : > { %1336 = vmatpush1.bf16.msra.mxu0 %v3973_v3  ;;  %v3530_v3 = vcombine.high %v1514_v63, %v1518_v0 }
 0x177   : > { %1337 = vmatprep.subr.bf16.mxu0 %v3978_v4  ;;  %v4013_v4 = vld [vmem:[%s4776_s10 + $0x2a4] ss:$8 sps:$4 sm:$0xff]  }
 0x178   : > { %2228 = vmatprep.subr.bf16.mxu1 %v3530_v3  ;;  %v4076_v3 = vld [vmem:[%s4776_s10 + $0x3f0] ss:$8 sps:$4 sm:$0xff]  }
 0x17a   : > { %1338 = vmatpush1.bf16.msra.mxu0 %v3976_v5  ;;  %v1522_v5 = vld [vmem:[%s4785_s14 + $0x280] sm:$0xff] }
 0x17b   : > { %1348 = vmatprep.subr.bf16.mxu0 %v3983_v6  ;;  %v1526_v6 = vld [vmem:[%s4785_s14 + $0x2a0] sm:$0xff] }
 0x17c   : > { %v3537_v14 = vcombine.low %v1522_v5, %v1526_v6 }
 0x17d   : > { %1340 = vmatmul.mubr.bf16.vlgmr.msra.gmra.mrb[0].mxu0 %v3323_v8  ;;  %v3529_v8 = vcombine.low %v1514_v63, %v1518_v0  ;;  %v4070_v63 = vld [vmem:[%s4776_s10 + $0x3d0] ss:$8 sps:$4 sm:$0xff]   ;;  %v4075_v0 = vld [vmem:[%s4776_s10 + $0x3e4] ss:$8 sps:$4 sm:$0xff]  }
 0x17e   : > { %1349 = vmatpush1.bf16.msra.mxu0 %v3981_v9  ;;  %1380 = vmatprep.mubr.bf16.mxu0 %v3326_v10  ;;  %v4011_v9 = vld [vmem:[%s4776_s10 + $0x2a0] ss:$8 sps:$4 sm:$0xff]   ;;  %v3538_v10 = vcombine.high %v1522_v5, %v1526_v6 }
 0x17f   : > { %1350 = vmatprep.subr.bf16.mxu0 %v3986_v11  ;;  %v4016_v11 = vld [vmem:[%s4776_s10 + $0x2b4] ss:$8 sps:$4 sm:$0xff]   ;;  %2229 = vmatpush1.bf16.msra.mxu1 %v3529_v8  ;;  %v1554_v5 = vld [vmem:[%s4785_s14 + $0x380] sm:$0xff] }
 0x180   : > { %2230 = vmatprep.subr.bf16.mxu1 %v3538_v10  ;;  %v1558_v6 = vld [vmem:[%s4785_s14 + $0x3a0] sm:$0xff] }
 0x181   : > { %v3570_v8 = vcombine.high %v1554_v5, %v1558_v6  ;;  %v1562_v10 = vld [vmem:[%s4785_s14 + $0x3c0] sm:$0xff] }
 0x182   : > { %1351 = vmatpush1.bf16.msra.mxu0 %v3984_v15  ;;  %v4014_v15 = vld [vmem:[%s4776_s10 + $0x2b0] ss:$8 sps:$4 sm:$0xff]  }
 0x183   : > { %1352 = vmatprep.subr.bf16.mxu0 %v3989_v19  ;;  %v1542_v19 = vld [vmem:[%s4785_s14 + $0x320] sm:$0xff]  ;;  %2231 = vmatpush1.bf16.msra.mxu1 %v3537_v14  ;;  %v1443_v14 = vld [vmem:[%s4785_s14 + $0x8] sm:$0xff] }
 0x184   : > { %2232 = vmatprep.subr.bf16.mxu1 %v3546_v16  ;;  %v3554_v22 = vcombine.high %v1538_v18, %v1542_v19 }
 0x186   : > { %1353 = vmatpush1.bf16.msra.mxu0 %v3987_v24  ;;  %v1546_v24 = vld [vmem:[%s4785_s14 + $0x340] sm:$0xff] }
 0x187   : > { %1354 = vmatprep.subr.bf16.mxu0 %v3992_v26  ;;  %2233 = vmatpush1.bf16.msra.mxu1 %v3545_v20  ;;  %v3553_v26 = vcombine.low %v1538_v18, %v1542_v19  ;;  %v3562_v28 = vcombine.high %v1546_v24, %v1550_v25  ;;  %v588_v18 = vlaneseq }
 0x188   : > { %2234 = vmatprep.subr.bf16.mxu1 %v3554_v22 }
 0x189   : > { %v4980_v19 = vshrl.u32 %v588_v18, 7  ;;  %v1547_v18 = vld [vmem:[%s4785_s14 + $0x348] sm:$0xff] }
 0x18a   : > { %1355 = vmatpush1.bf16.msra.mxu0 %v3990_v30  ;;  %v3561_v30 = vcombine.low %v1546_v24, %v1550_v25 }
 0x18b   : > { %1356 = vmatprep.subr.bf16.mxu0 %v3995_v32  ;;  %2235 = vmatpush1.bf16.msra.mxu1 %v3553_v26  ;;  %v4028_v32 = vld [vmem:[%s4776_s10 + $0x2f4] ss:$8 sps:$4 sm:$0xff]   ;;  %v590_v20 = vsub.s32 0, %v4980_v19  ;;  %v594_v22 = vsub.s32 1, %v4980_v19 }
 0x18c   : > { %2236 = vmatprep.subr.bf16.mxu1 %v3562_v28 }
 0x18e   : > { %1357 = vmatpush1.bf16.msra.mxu0 %v3993_v36  ;;  %v3325_v36 = vcombine.low %v4869_v7, %v4869_v7  ;;  %v4037_v7 = vld [vmem:[%s4776_s10 + $0x320] ss:$8 sps:$4 sm:$0xff]  }
 0x18f   : > { %1358 = vmatprep.subr.bf16.mxu0 %v3998_v38  ;;  %2237 = vmatpush1.bf16.msra.mxu1 %v3561_v30  ;;  %v3328_v38 = vcombine.high %v4935_v35, %v4935_v35 }
 0x190   : > { %2238 = vmatprep.subr.bf16.mxu1 %v3570_v8 }
 0x192   : > { %1359 = vmatpush1.bf16.msra.mxu0 %v3996_v42  ;;  %v4042_v42 = vld [vmem:[%s4776_s10 + $0x334] ss:$8 sps:$4 sm:$0xff]  }
 0x193   : > { %1360 = vmatprep.subr.bf16.mxu0 %v4001_v44  ;;  %v4045_v44 = vld [vmem:[%s4776_s10 + $0x344] ss:$8 sps:$4 sm:$0xff]  }
 0x196   : > { %1361 = vmatpush1.bf16.msra.mxu0 %v3999_v48  ;;  %v4051_v48 = vld [vmem:[%s4776_s10 + $0x364] ss:$8 sps:$4 sm:$0xff]  }
 0x197   : > { %1362 = vmatprep.subr.bf16.mxu0 %v4004_v50  ;;  %v4054_v50 = vld [vmem:[%s4776_s10 + $0x374] ss:$8 sps:$4 sm:$0xff]  }
 0x19a   : > { %1363 = vmatpush1.bf16.msra.mxu0 %v4002_v54  ;;  %v4060_v54 = vld [vmem:[%s4776_s10 + $0x394] ss:$8 sps:$4 sm:$0xff]  }
 0x19b   : > { %1364 = vmatprep.subr.bf16.mxu0 %v4007_v56  ;;  %v4063_v56 = vld [vmem:[%s4776_s10 + $0x3a4] ss:$8 sps:$4 sm:$0xff]  }
 0x19e   : > { %1365 = vmatpush1.bf16.msra.mxu0 %v4005_v60  ;;  %v4069_v60 = vld [vmem:[%s4776_s10 + $0x3c4] ss:$8 sps:$4 sm:$0xff]  }
 0x19f   : > { %1366 = vmatprep.subr.bf16.mxu0 %v4010_v62  ;;  %v4072_v62 = vld [vmem:[%s4776_s10 + $0x3d4] ss:$8 sps:$4 sm:$0xff]  }
 0x1a2   : > { %1367 = vmatpush1.bf16.msra.mxu0 %v4008_v2  ;;  %v4078_v2 = vld [vmem:[%s4776_s10 + $0x3f4] ss:$8 sps:$4 sm:$0xff]  }
 0x1a3   : > { %1368 = vmatprep.subr.bf16.mxu0 %v4013_v4  ;;  %v3327_v4 = vcombine.low %v4935_v35, %v4935_v35 }
 0x1a6   : > { %1369 = vmatpush1.bf16.msra.mxu0 %v4011_v9  ;;  %v3569_v9 = vcombine.low %v1554_v5, %v1558_v6  ;;  %v1523_v5 = vld [vmem:[%s4785_s14 + $0x288] sm:$0xff] }
 0x1a7   : > { %1370 = vmatprep.subr.bf16.mxu0 %v4016_v11  ;;  %v1566_v11 = vld [vmem:[%s4785_s14 + $0x3e0] sm:$0xff]  ;;  %v1527_v6 = vld [vmem:[%s4785_s14 + $0x2a8] sm:$0xff] }
 0x1a8   : > { %2239 = vmatpush1.bf16.msra.mxu1 %v3569_v9  ;;  %v3578_v12 = vcombine.high %v1562_v10, %v1566_v11  ;;  %v3577_v13 = vcombine.low %v1562_v10, %v1566_v11  ;;  %v3540_v9 = vcombine.high %v1523_v5, %v1527_v6  ;;  %v1531_v10 = vld [vmem:[%s4785_s14 + $0x2c8] sm:$0xff] }
 0x1a9   : > { %v1535_v11 = vld [vmem:[%s4785_s14 + $0x2e8] sm:$0xff] }
 0x1aa   : > { %1371 = vmatpush1.bf16.msra.mxu0 %v4014_v15  ;;  %2240 = vmatprep.subr.bf16.mxu1 %v3578_v12  ;;  %v1447_v15 = vld [vmem:[%s4785_s14 + $0x28] sm:$0xff]  ;;  %v3539_v12 = vcombine.low %v1523_v5, %v1527_v6  ;;  %v1516_v6 = vld [vmem:[%s4785_s14 + $0x250] sm:$0xff] }
 0x1ab   : > { %1372 = vmatprep.subr.bf16.mxu0 %v4019_v17  ;;  %v3460_v16 = vcombine.high %v1443_v14, %v1447_v15  ;;  %v3459_v17 = vcombine.low %v1443_v14, %v1447_v15  ;;  %v1539_v14 = vld [vmem:[%s4785_s14 + $0x308] sm:$0xff] }
 0x1ac   : > { %2241 = vmatpush1.bf16.msra.mxu1 %v3577_v13  ;;  %v3548_v13 = vcombine.high %v1531_v10, %v1535_v11  ;;  %v1543_v15 = vld [vmem:[%s4785_s14 + $0x328] sm:$0xff] }
 0x1ad   : > { %2251 = vmatprep.subr.bf16.mxu1 %v3460_v16  ;;  %v3547_v16 = vcombine.low %v1531_v10, %v1535_v11  ;;  %v1524_v11 = vld [vmem:[%s4785_s14 + $0x290] sm:$0xff] }
 0x1ae   : > { %1373 = vmatpush1.bf16.msra.mxu0 %v4017_v21  ;;  %v586_v21 = vld [vmem:[%s381_s5] sm:$0x3] }
 0x1af   : > { %1374 = vmatprep.subr.bf16.mxu0 %v4022_v23  ;;  %v591_v23 = vrot.slane %v586_v21, %v590_v20  ;;  %v595_v24 = vrot.slane %v586_v21, %v594_v22  ;;  %v1551_v21 = vld [vmem:[%s4785_s14 + $0x368] sm:$0xff] }
 0x1b2   : > { %1375 = vmatpush1.bf16.msra.mxu0 %v4020_v27 }
 0x1b3   : > { %1376 = vmatprep.subr.bf16.mxu0 %v4025_v29 }
 0x1b6   : > { %1377 = vmatpush1.bf16.msra.mxu0 %v4023_v31 }
 0x1b7   : > { %1378 = vmatprep.subr.bf16.mxu0 %v4028_v32 }
 0x1ba   : > { %1379 = vmatpush1.bf16.msra.mxu0 %v4026_v33  ;;  %v1451_v33 = vld [vmem:[%s4785_s14 + $0x48] sm:$0xff] }
 0x1bb   : > { %1389 = vmatprep.subr.bf16.mxu0 %v4033_v34  ;;  %v1455_v34 = vld [vmem:[%s4785_s14 + $0x68] sm:$0xff] }
 0x1bd   : > { %1381 = vmatmul.mubr.bf16.vlgmr.msra.gmra.mrb[0].mxu0 %v3325_v36 }
 0x1be   : > { %1390 = vmatpush1.bf16.msra.mxu0 %v4031_v37  ;;  %1421 = vmatprep.mubr.bf16.mxu0 %v3328_v38  ;;  %v3468_v37 = vcombine.high %v1451_v33, %v1455_v34  ;;  %v1459_v38 = vld [vmem:[%s4785_s14 + $0x88] sm:$0xff] }
 0x1bf   : > { %1391 = vmatprep.subr.bf16.mxu0 %v4036_v39  ;;  %v1463_v39 = vld [vmem:[%s4785_s14 + $0xa8] sm:$0xff] }
 0x1c2   : > { %1392 = vmatpush1.bf16.msra.mxu0 %v4034_v40  ;;  %v3467_v40 = vcombine.low %v1451_v33, %v1455_v34  ;;  %v1444_v33 = vld [vmem:[%s4785_s14 + $0x10] sm:$0xff] }
 0x1c3   : > { %1393 = vmatprep.subr.bf16.mxu0 %v4039_v41  ;;  %v3476_v41 = vcombine.high %v1459_v38, %v1463_v39  ;;  %v1448_v34 = vld [vmem:[%s4785_s14 + $0x30] sm:$0xff] }
 0x1c6   : > { %1394 = vmatpush1.bf16.msra.mxu0 %v4037_v7  ;;  %v1467_v7 = vld [vmem:[%s4785_s14 + $0xc8] sm:$0xff] }
 0x1c7   : > { %1395 = vmatprep.subr.bf16.mxu0 %v4042_v42  ;;  %v1471_v42 = vld [vmem:[%s4785_s14 + $0xe8] sm:$0xff] }
 0x1ca   : > { %1396 = vmatpush1.bf16.msra.mxu0 %v4040_v43  ;;  %v3475_v43 = vcombine.low %v1459_v38, %v1463_v39  ;;  %v3462_v38 = vcombine.high %v1444_v33, %v1448_v34  ;;  %v1452_v39 = vld [vmem:[%s4785_s14 + $0x50] sm:$0xff] }
 0x1cb   : > { %1397 = vmatprep.subr.bf16.mxu0 %v4045_v44  ;;  %v3484_v44 = vcombine.high %v1467_v7, %v1471_v42 }
 0x1ce   : > { %1398 = vmatpush1.bf16.msra.mxu0 %v4043_v45  ;;  %v1475_v45 = vld [vmem:[%s4785_s14 + $0x108] sm:$0xff] }
 0x1cf   : > { %1399 = vmatprep.subr.bf16.mxu0 %v4048_v46  ;;  %v1479_v46 = vld [vmem:[%s4785_s14 + $0x128] sm:$0xff] }
 0x1d2   : > { %1400 = vmatpush1.bf16.msra.mxu0 %v4046_v47  ;;  %v3483_v47 = vcombine.low %v1467_v7, %v1471_v42  ;;  %v1460_v42 = vld [vmem:[%s4785_s14 + $0x90] sm:$0xff] }
 0x1d3   : > { %1401 = vmatprep.subr.bf16.mxu0 %v4051_v48  ;;  %v3492_v48 = vcombine.high %v1475_v45, %v1479_v46 }
 0x1d6   : > { %1402 = vmatpush1.bf16.msra.mxu0 %v4049_v49  ;;  %v1483_v49 = vld [vmem:[%s4785_s14 + $0x148] sm:$0xff] }
 0x1d7   : > { %1403 = vmatprep.subr.bf16.mxu0 %v4054_v50  ;;  %v1487_v50 = vld [vmem:[%s4785_s14 + $0x168] sm:$0xff] }
 0x1da   : > { %1404 = vmatpush1.bf16.msra.mxu0 %v4052_v51  ;;  %v3491_v51 = vcombine.low %v1475_v45, %v1479_v46  ;;  %v1468_v46 = vld [vmem:[%s4785_s14 + $0xd0] sm:$0xff] }
 0x1db   : > { %1405 = vmatprep.subr.bf16.mxu0 %v4057_v52  ;;  %v3500_v52 = vcombine.high %v1483_v49, %v1487_v50 }
 0x1de   : > { %1406 = vmatpush1.bf16.msra.mxu0 %v4055_v53  ;;  %v1491_v53 = vld [vmem:[%s4785_s14 + $0x188] sm:$0xff] }
 0x1df   : > { %1407 = vmatprep.subr.bf16.mxu0 %v4060_v54  ;;  %v1495_v54 = vld [vmem:[%s4785_s14 + $0x1a8] sm:$0xff] }
 0x1e2   : > { %1408 = vmatpush1.bf16.msra.mxu0 %v4058_v55  ;;  %v3499_v55 = vcombine.low %v1483_v49, %v1487_v50  ;;  %v1476_v50 = vld [vmem:[%s4785_s14 + $0x110] sm:$0xff] }
 0x1e3   : > { %1409 = vmatprep.subr.bf16.mxu0 %v4063_v56  ;;  %v3508_v56 = vcombine.high %v1491_v53, %v1495_v54 }
 0x1e6   : > { %1410 = vmatpush1.bf16.msra.mxu0 %v4061_v57  ;;  %v1499_v57 = vld [vmem:[%s4785_s14 + $0x1c8] sm:$0xff] }
 0x1e7   : > { %1411 = vmatprep.subr.bf16.mxu0 %v4066_v58  ;;  %v1503_v58 = vld [vmem:[%s4785_s14 + $0x1e8] sm:$0xff] }
 0x1ea   : > { %1412 = vmatpush1.bf16.msra.mxu0 %v4064_v59  ;;  %v3507_v59 = vcombine.low %v1491_v53, %v1495_v54  ;;  %v1484_v54 = vld [vmem:[%s4785_s14 + $0x150] sm:$0xff] }
 0x1eb   : > { %1413 = vmatprep.subr.bf16.mxu0 %v4069_v60  ;;  %v3516_v60 = vcombine.high %v1499_v57, %v1503_v58 }
 0x1ee   : > { %1414 = vmatpush1.bf16.msra.mxu0 %v4067_v61  ;;  %v1507_v61 = vld [vmem:[%s4785_s14 + $0x208] sm:$0xff] }
 0x1ef   : > { %1415 = vmatprep.subr.bf16.mxu0 %v4072_v62  ;;  %v1511_v62 = vld [vmem:[%s4785_s14 + $0x228] sm:$0xff] }
 0x1f2   : > { %1416 = vmatpush1.bf16.msra.mxu0 %v4070_v63  ;;  %v3515_v63 = vcombine.low %v1499_v57, %v1503_v58  ;;  %v1492_v58 = vld [vmem:[%s4785_s14 + $0x190] sm:$0xff] }
 0x1f3   : > { %1417 = vmatprep.subr.bf16.mxu0 %v4075_v0  ;;  %v3524_v0 = vcombine.high %v1507_v61, %v1511_v62 }
 0x1f6   : > { %1418 = vmatpush1.bf16.msra.mxu0 %v4073_v1  ;;  %v1515_v1 = vld [vmem:[%s4785_s14 + $0x248] sm:$0xff] }
 0x1f7   : > { %1419 = vmatprep.subr.bf16.mxu0 %v4078_v2  ;;  %v1519_v2 = vld [vmem:[%s4785_s14 + $0x268] sm:$0xff] }
 0x1f8   : > { %v3531_v8 = vcombine.low %v1515_v1, %v1519_v2 }
 0x1fa   : > { %1420 = vmatpush1.bf16.msra.mxu0 %v4076_v3  ;;  %v3523_v3 = vcombine.low %v1507_v61, %v1511_v62  ;;  %v1500_v62 = vld [vmem:[%s4785_s14 + $0x1d0] sm:$0xff] }
 0x1fd   : > { %1422 = vmatmul.mubr.bf16.vlgmr.msra.gmra.mrb[0].mxu0 %v3327_v4  ;;  %v3532_v4 = vcombine.high %v1515_v1, %v1519_v2  ;;  %v1508_v2 = vld [vmem:[%s4785_s14 + $0x210] sm:$0xff] }
 0x2d0   : > { %v1423_v25 = vpop.f32.mrb[0].mxu0 }
 0x2d1   : > { %v3747_v26 = vadd.f32 %v1423_v25, %v591_v23  ;;  %v1425_v27 = vpop.f32.mrb[1].mxu0  ;;  %v3555_v23 = vcombine.low %v1539_v14, %v1543_v15  ;;  %v1555_v25 = vld [vmem:[%s4785_s14 + $0x388] sm:$0xff] }
 0x2d2   : > { %v3748_v28 = vadd.f32 %v1425_v27, %v595_v24  ;;  %v1427_v29 = vpop.f32.mrb[2].mxu0  ;;  %v3564_v24 = vcombine.high %v1547_v18, %v1551_v21  ;;  %v3563_v27 = vcombine.low %v1547_v18, %v1551_v21  ;;  %v1540_v21 = vld [vmem:[%s4785_s14 + $0x310] sm:$0xff] }
 0x2d3   : > { %v1430_v30 = vmax.f32 %v3747_v26, 0.0  ;;  %v1428_v31 = vpop.f32.mrb[3].mxu0  ;;  %v1559_v26 = vld [vmem:[%s4785_s14 + $0x3a8] sm:$0xff] }
 0x2d4   : > { %v1431_v32 = vmax.f32 %v3748_v28, 0.0  ;;  %v3572_v28 = vcombine.high %v1555_v25, %v1559_v26  ;;  %v1563_v29 = vld [vmem:[%s4785_s14 + $0x3c8] sm:$0xff]  ;;  %v3571_v31 = vcombine.low %v1555_v25, %v1559_v26  ;;  %v1548_v26 = vld [vmem:[%s4785_s14 + $0x350] sm:$0xff] }
 0x2d5   : > { %v4994_v36 = vpack.c.bf16 %v1430_v30, %v1430_v30  ;;  %v1567_v30 = vld [vmem:[%s4785_s14 + $0x3e8] sm:$0xff] }
 0x2d6   : > { %v4992_v35 = vpack.c.bf16 %v1431_v32, %v1431_v32  ;;  %v3580_v32 = vcombine.high %v1563_v29, %v1567_v30 }
 0x2d8   : > { %2242 = vmatprep.mubr.bf16.mxu1 %v4992_v35 }
 0x2d9   : > { %2243 = vmatmul.mubr.bf16.vlgmr.msra.gmra.mrb[0].mxu1 %v4994_v36 }
 0x2da   : > { %2252 = vmatpush1.bf16.msra.mxu1 %v3459_v17  ;;  %2283 = vmatprep.mubr.bf16.mxu1 %v4992_v35  ;;  %v3556_v17 = vcombine.high %v1539_v14, %v1543_v15  ;;  %v1532_v15 = vld [vmem:[%s4785_s14 + $0x2d0] sm:$0xff] }
 0x2db   : > { %2253 = vmatprep.subr.bf16.mxu1 %v3468_v37  ;;  %v3579_v37 = vcombine.low %v1563_v29, %v1567_v30  ;;  %v1556_v30 = vld [vmem:[%s4785_s14 + $0x390] sm:$0xff] }
 0x2de   : > { %2254 = vmatpush1.bf16.msra.mxu1 %v3467_v40  ;;  %v1456_v40 = vld [vmem:[%s4785_s14 + $0x70] sm:$0xff] }
 0x2df   : > { %2255 = vmatprep.subr.bf16.mxu1 %v3476_v41  ;;  %v3461_v41 = vcombine.low %v1444_v33, %v1448_v34  ;;  %v3470_v7 = vcombine.high %v1452_v39, %v1456_v40  ;;  %v1564_v34 = vld [vmem:[%s4785_s14 + $0x3d0] sm:$0xff] }
 0x2e2   : > { %2256 = vmatpush1.bf16.msra.mxu1 %v3475_v43  ;;  %v1464_v43 = vld [vmem:[%s4785_s14 + $0xb0] sm:$0xff] }
 0x2e3   : > { %2257 = vmatprep.subr.bf16.mxu1 %v3484_v44  ;;  %v3469_v44 = vcombine.low %v1452_v39, %v1456_v40  ;;  %v3478_v45 = vcombine.high %v1460_v42, %v1464_v43  ;;  %v1445_v40 = vld [vmem:[%s4785_s14 + $0x18] sm:$0xff] }
 0x2e6   : > { %2258 = vmatpush1.bf16.msra.mxu1 %v3483_v47  ;;  %v1472_v47 = vld [vmem:[%s4785_s14 + $0xf0] sm:$0xff] }
 0x2e7   : > { %2259 = vmatprep.subr.bf16.mxu1 %v3492_v48  ;;  %v3477_v48 = vcombine.low %v1460_v42, %v1464_v43  ;;  %v3486_v49 = vcombine.high %v1468_v46, %v1472_v47  ;;  %v1453_v43 = vld [vmem:[%s4785_s14 + $0x58] sm:$0xff] }
 0x2ea   : > { %2260 = vmatpush1.bf16.msra.mxu1 %v3491_v51  ;;  %v1480_v51 = vld [vmem:[%s4785_s14 + $0x130] sm:$0xff] }
 0x2eb   : > { %2261 = vmatprep.subr.bf16.mxu1 %v3500_v52  ;;  %v3485_v52 = vcombine.low %v1468_v46, %v1472_v47  ;;  %v3494_v53 = vcombine.high %v1476_v50, %v1480_v51  ;;  %v1461_v47 = vld [vmem:[%s4785_s14 + $0x98] sm:$0xff] }
 0x2ee   : > { %2262 = vmatpush1.bf16.msra.mxu1 %v3499_v55  ;;  %v1488_v55 = vld [vmem:[%s4785_s14 + $0x170] sm:$0xff] }
 0x2ef   : > { %2263 = vmatprep.subr.bf16.mxu1 %v3508_v56  ;;  %v3493_v56 = vcombine.low %v1476_v50, %v1480_v51  ;;  %v3502_v57 = vcombine.high %v1484_v54, %v1488_v55  ;;  %v1469_v51 = vld [vmem:[%s4785_s14 + $0xd8] sm:$0xff] }
 0x2f2   : > { %2264 = vmatpush1.bf16.msra.mxu1 %v3507_v59  ;;  %v1496_v59 = vld [vmem:[%s4785_s14 + $0x1b0] sm:$0xff] }
 0x2f3   : > { %2265 = vmatprep.subr.bf16.mxu1 %v3516_v60  ;;  %v3501_v60 = vcombine.low %v1484_v54, %v1488_v55  ;;  %v3510_v61 = vcombine.high %v1492_v58, %v1496_v59  ;;  %v1477_v55 = vld [vmem:[%s4785_s14 + $0x118] sm:$0xff] }
 0x2f6   : > { %2266 = vmatpush1.bf16.msra.mxu1 %v3515_v63  ;;  %v1504_v63 = vld [vmem:[%s4785_s14 + $0x1f0] sm:$0xff] }
 0x2f7   : > { %2267 = vmatprep.subr.bf16.mxu1 %v3524_v0  ;;  %v3509_v0 = vcombine.low %v1492_v58, %v1496_v59  ;;  %v3518_v1 = vcombine.high %v1500_v62, %v1504_v63  ;;  %v1485_v58 = vld [vmem:[%s4785_s14 + $0x158] sm:$0xff] }
 0x2f8   : > { %v1489_v59 = vld [vmem:[%s4785_s14 + $0x178] sm:$0xff] }
 0x2fa   : > { %2268 = vmatpush1.bf16.msra.mxu1 %v3523_v3  ;;  %v1512_v3 = vld [vmem:[%s4785_s14 + $0x230] sm:$0xff] }
 0x2fb   : > { %2269 = vmatprep.subr.bf16.mxu1 %v3532_v4  ;;  %v3517_v4 = vcombine.low %v1500_v62, %v1504_v63  ;;  %v3526_v5 = vcombine.high %v1508_v2, %v1512_v3  ;;  %v1493_v62 = vld [vmem:[%s4785_s14 + $0x198] sm:$0xff] }
 0x2fc   : > { %v1497_v63 = vld [vmem:[%s4785_s14 + $0x1b8] sm:$0xff] }
 0x2fe   : > { %2270 = vmatpush1.bf16.msra.mxu1 %v3531_v8  ;;  %v1520_v8 = vld [vmem:[%s4785_s14 + $0x270] sm:$0xff] }
 0x2ff   : > { %2271 = vmatprep.subr.bf16.mxu1 %v3540_v9  ;;  %v3525_v9 = vcombine.low %v1508_v2, %v1512_v3  ;;  %v3534_v10 = vcombine.high %v1516_v6, %v1520_v8  ;;  %v1501_v2 = vld [vmem:[%s4785_s14 + $0x1d8] sm:$0xff] }
 0x300   : > { %v1505_v3 = vld [vmem:[%s4785_s14 + $0x1f8] sm:$0xff] }
 0x302   : > { %2272 = vmatpush1.bf16.msra.mxu1 %v3539_v12  ;;  %v1528_v12 = vld [vmem:[%s4785_s14 + $0x2b0] sm:$0xff] }
 0x303   : > { %2273 = vmatprep.subr.bf16.mxu1 %v3548_v13  ;;  %v3533_v13 = vcombine.low %v1516_v6, %v1520_v8  ;;  %v3542_v14 = vcombine.high %v1524_v11, %v1528_v12  ;;  %v1509_v6 = vld [vmem:[%s4785_s14 + $0x218] sm:$0xff] }
 0x304   : > { %v1513_v8 = vld [vmem:[%s4785_s14 + $0x238] sm:$0xff] }
 0x306   : > { %2274 = vmatpush1.bf16.msra.mxu1 %v3547_v16  ;;  %v1536_v16 = vld [vmem:[%s4785_s14 + $0x2f0] sm:$0xff] }
 0x307   : > { %2275 = vmatprep.subr.bf16.mxu1 %v3556_v17  ;;  %v3541_v17 = vcombine.low %v1524_v11, %v1528_v12  ;;  %v3550_v18 = vcombine.high %v1532_v15, %v1536_v16  ;;  %v1517_v11 = vld [vmem:[%s4785_s14 + $0x258] sm:$0xff] }
 0x308   : > { %v1521_v12 = vld [vmem:[%s4785_s14 + $0x278] sm:$0xff] }
 0x30a   : > { %2276 = vmatpush1.bf16.msra.mxu1 %v3555_v23  ;;  %v1544_v23 = vld [vmem:[%s4785_s14 + $0x330] sm:$0xff] }
 0x30b   : > { %2277 = vmatprep.subr.bf16.mxu1 %v3564_v24  ;;  %v3549_v24 = vcombine.low %v1532_v15, %v1536_v16  ;;  %v3558_v25 = vcombine.high %v1540_v21, %v1544_v23  ;;  %v1525_v15 = vld [vmem:[%s4785_s14 + $0x298] sm:$0xff] }
 0x30c   : > { %v1529_v16 = vld [vmem:[%s4785_s14 + $0x2b8] sm:$0xff] }
 0x30e   : > { %2278 = vmatpush1.bf16.msra.mxu1 %v3563_v27  ;;  %v1552_v27 = vld [vmem:[%s4785_s14 + $0x370] sm:$0xff] }
 0x30f   : > { %2279 = vmatprep.subr.bf16.mxu1 %v3572_v28  ;;  %v3557_v28 = vcombine.low %v1540_v21, %v1544_v23  ;;  %v3566_v29 = vcombine.high %v1548_v26, %v1552_v27  ;;  %v1533_v21 = vld [vmem:[%s4785_s14 + $0x2d8] sm:$0xff] }
 0x310   : > { %v1537_v23 = vld [vmem:[%s4785_s14 + $0x2f8] sm:$0xff] }
 0x312   : > { %2280 = vmatpush1.bf16.msra.mxu1 %v3571_v31  ;;  %v1560_v31 = vld [vmem:[%s4785_s14 + $0x3b0] sm:$0xff] }
 0x313   : > { %2281 = vmatprep.subr.bf16.mxu1 %v3580_v32  ;;  %v3565_v32 = vcombine.low %v1548_v26, %v1552_v27  ;;  %v3574_v33 = vcombine.high %v1556_v30, %v1560_v31  ;;  %v1541_v26 = vld [vmem:[%s4785_s14 + $0x318] sm:$0xff] }
 0x314   : > { %v1545_v27 = vld [vmem:[%s4785_s14 + $0x338] sm:$0xff] }
 0x316   : > { %2282 = vmatpush1.bf16.msra.mxu1 %v3579_v37  ;;  %v1568_v37 = vld [vmem:[%s4785_s14 + $0x3f0] sm:$0xff] }
 0x317   : > { %2292 = vmatprep.subr.bf16.mxu1 %v3462_v38  ;;  %v3573_v38 = vcombine.low %v1556_v30, %v1560_v31  ;;  %v3582_v39 = vcombine.high %v1564_v34, %v1568_v37  ;;  %v1549_v30 = vld [vmem:[%s4785_s14 + $0x358] sm:$0xff] }
 0x318   : > { %v1553_v31 = vld [vmem:[%s4785_s14 + $0x378] sm:$0xff] }
 0x319   : > { %2284 = vmatmul.mubr.bf16.vlgmr.msra.gmra.mrb[4].mxu1 %v4994_v36 }
 0x31a   : > { %2293 = vmatpush1.bf16.msra.mxu1 %v3461_v41  ;;  %2324 = vmatprep.mubr.bf16.mxu1 %v4992_v35  ;;  %v1449_v41 = vld [vmem:[%s4785_s14 + $0x38] sm:$0xff] }
 0x31b   : > { %2294 = vmatprep.subr.bf16.mxu1 %v3470_v7  ;;  %v3581_v7 = vcombine.low %v1564_v34, %v1568_v37  ;;  %v3464_v42 = vcombine.high %v1445_v40, %v1449_v41  ;;  %v1557_v34 = vld [vmem:[%s4785_s14 + $0x398] sm:$0xff] }
 0x31c   : > { %v1561_v37 = vld [vmem:[%s4785_s14 + $0x3b8] sm:$0xff] }
 0x31e   : > { %2295 = vmatpush1.bf16.msra.mxu1 %v3469_v44  ;;  %v1457_v44 = vld [vmem:[%s4785_s14 + $0x78] sm:$0xff] }
 0x31f   : > { %2296 = vmatprep.subr.bf16.mxu1 %v3478_v45  ;;  %v3463_v45 = vcombine.low %v1445_v40, %v1449_v41  ;;  %v3472_v46 = vcombine.high %v1453_v43, %v1457_v44  ;;  %v1565_v40 = vld [vmem:[%s4785_s14 + $0x3d8] sm:$0xff] }
 0x320   : > { %v1569_v41 = vld [vmem:[%s4785_s14 + $0x3f8] sm:$0xff] }
 0x322   : > { %2297 = vmatpush1.bf16.msra.mxu1 %v3477_v48  ;;  %v1465_v48 = vld [vmem:[%s4785_s14 + $0xb8] sm:$0xff] }
 0x323   : > { %2298 = vmatprep.subr.bf16.mxu1 %v3486_v49  ;;  %v3471_v49 = vcombine.low %v1453_v43, %v1457_v44  ;;  %v3480_v50 = vcombine.high %v1461_v47, %v1465_v48  ;;  %v3583_v43 = vcombine.low %v1565_v40, %v1569_v41  ;;  %v1432_v44 = vld [vmem:[#allocation2] sm:$0xff] }
 0x326   : > { %2299 = vmatpush1.bf16.msra.mxu1 %v3485_v52  ;;  %v1473_v52 = vld [vmem:[%s4785_s14 + $0xf8] sm:$0xff] }
 0x327   : > { %2300 = vmatprep.subr.bf16.mxu1 %v3494_v53  ;;  %v3479_v53 = vcombine.low %v1461_v47, %v1465_v48  ;;  %v3488_v54 = vcombine.high %v1469_v51, %v1473_v52 }
 0x32a   : > { %2301 = vmatpush1.bf16.msra.mxu1 %v3493_v56  ;;  %v1481_v56 = vld [vmem:[%s4785_s14 + $0x138] sm:$0xff] }
 0x32b   : > { %2302 = vmatprep.subr.bf16.mxu1 %v3502_v57  ;;  %v3487_v57 = vcombine.low %v1469_v51, %v1473_v52  ;;  %v1434_v52 = vld [vmem:[#allocation2 + $0x10] sm:$0xff] }
 0x32e   : > { %2303 = vmatpush1.bf16.msra.mxu1 %v3501_v60  ;;  %v3495_v60 = vcombine.low %v1477_v55, %v1481_v56 }
 0x32f   : > { %2304 = vmatprep.subr.bf16.mxu1 %v3510_v61  ;;  %v3504_v61 = vcombine.high %v1485_v58, %v1489_v59 }
 0x332   : > { %2305 = vmatpush1.bf16.msra.mxu1 %v3509_v0  ;;  %v3503_v0 = vcombine.low %v1485_v58, %v1489_v59  ;;  %v1437_v59 = vld [vmem:[#allocation2 + $0x28] sm:$0xff] }
 0x333   : > { %2306 = vmatprep.subr.bf16.mxu1 %v3518_v1  ;;  %v3512_v1 = vcombine.high %v1493_v62, %v1497_v63 }
 0x336   : > { %2307 = vmatpush1.bf16.msra.mxu1 %v3517_v4  ;;  %v3511_v4 = vcombine.low %v1493_v62, %v1497_v63 }
 0x337   : > { %2308 = vmatprep.subr.bf16.mxu1 %v3526_v5  ;;  %v3520_v5 = vcombine.high %v1501_v2, %v1505_v3 }
 0x33a   : > { %2309 = vmatpush1.bf16.msra.mxu1 %v3525_v9  ;;  %v3519_v9 = vcombine.low %v1501_v2, %v1505_v3  ;;  %v1438_v2 = vld [vmem:[#allocation2 + $0x30] sm:$0xff]  ;;  %v1439_v3 = vld [vmem:[#allocation2 + $0x38] sm:$0xff] }
 0x33b   : > { %2310 = vmatprep.subr.bf16.mxu1 %v3534_v10  ;;  %v3528_v10 = vcombine.high %v1509_v6, %v1513_v8 }
 0x33e   : > { %2311 = vmatpush1.bf16.msra.mxu1 %v3533_v13  ;;  %v3527_v13 = vcombine.low %v1509_v6, %v1513_v8 }
 0x33f   : > { %2312 = vmatprep.subr.bf16.mxu1 %v3542_v14  ;;  %v3536_v14 = vcombine.high %v1517_v11, %v1521_v12 }
 0x342   : > { %2313 = vmatpush1.bf16.msra.mxu1 %v3541_v17  ;;  %v3535_v17 = vcombine.low %v1517_v11, %v1521_v12  ;;  %v4081_v11 = vld [vmem:[#allocation12 + $0x40] sm:$0xff] (!%p3585_p7)  }
 0x343   : > { %2314 = vmatprep.subr.bf16.mxu1 %v3550_v18  ;;  %v3544_v18 = vcombine.high %v1525_v15, %v1529_v16  ;;  %v4082_v12 = vld [vmem:[#allocation12 + $0xc0] sm:$0xff] (!%p3585_p7)   ;;  %3659 = vmatprep.subr.bf16.mxu0 (!%p3585_p7), %v4081_v11  ;;  %v4125_v11 = vld [vmem:[#allocation12 + $0x158] sm:$0xff] (!%p3585_p7)  }
 0x346   : > { %2315 = vmatpush1.bf16.msra.mxu1 %v3549_v24  ;;  %v3543_v24 = vcombine.low %v1525_v15, %v1529_v16  ;;  %v4085_v15 = vld [vmem:[#allocation12 + $0x48] sm:$0xff] (!%p3585_p7)  }
 0x347   : > { %2316 = vmatprep.subr.bf16.mxu1 %v3558_v25  ;;  %v3552_v25 = vcombine.high %v1533_v21, %v1537_v23  ;;  %v4086_v16 = vld [vmem:[#allocation12 + $0xc8] sm:$0xff] (!%p3585_p7)  }
 0x34a   : > { %2317 = vmatpush1.bf16.msra.mxu1 %v3557_v28  ;;  %v3551_v28 = vcombine.low %v1533_v21, %v1537_v23  ;;  %v4089_v21 = vld [vmem:[#allocation12 + $0x50] sm:$0xff] (!%p3585_p7)  }
 0x34b   : > { %2318 = vmatprep.subr.bf16.mxu1 %v3566_v29  ;;  %v3560_v29 = vcombine.high %v1541_v26, %v1545_v27  ;;  %v4090_v23 = vld [vmem:[#allocation12 + $0xd0] sm:$0xff] (!%p3585_p7)  }
 0x34e   : > { %2319 = vmatpush1.bf16.msra.mxu1 %v3565_v32  ;;  %v3559_v32 = vcombine.low %v1541_v26, %v1545_v27  ;;  %v4093_v26 = vld [vmem:[#allocation12 + $0x58] sm:$0xff] (!%p3585_p7)  }
 0x34f   : > { %2320 = vmatprep.subr.bf16.mxu1 %v3574_v33  ;;  %v3568_v33 = vcombine.high %v1549_v30, %v1553_v31  ;;  %v4094_v27 = vld [vmem:[#allocation12 + $0xd8] sm:$0xff] (!%p3585_p7)  }
 0x352   : > { %2321 = vmatpush1.bf16.msra.mxu1 %v3573_v38  ;;  %v3567_v38 = vcombine.low %v1549_v30, %v1553_v31  ;;  %v4097_v30 = vld [vmem:[#allocation12 + $0x60] sm:$0xff] (!%p3585_p7)  }
 0x353   : > { %2322 = vmatprep.subr.bf16.mxu1 %v3582_v39  ;;  %v3576_v39 = vcombine.high %v1557_v34, %v1561_v37  ;;  %v4098_v31 = vld [vmem:[#allocation12 + $0xe0] sm:$0xff] (!%p3585_p7)  }
 0x356   : > { %2323 = vmatpush1.bf16.msra.mxu1 %v3581_v7  ;;  %v3575_v7 = vcombine.low %v1557_v34, %v1561_v37  ;;  %v4101_v34 = vld [vmem:[#allocation12 + $0x68] sm:$0xff] (!%p3585_p7)  }
 0x357   : > { %2333 = vmatprep.subr.bf16.mxu1 %v3464_v42  ;;  %v3584_v42 = vcombine.high %v1565_v40, %v1569_v41  ;;  %v4102_v37 = vld [vmem:[#allocation12 + $0xe8] sm:$0xff] (!%p3585_p7)   ;;  %v4105_v40 = vld [vmem:[#allocation12 + $0x70] sm:$0xff] (!%p3585_p7)  }
 0x358   : > { %v4106_v41 = vld [vmem:[#allocation12 + $0xf0] sm:$0xff] (!%p3585_p7)  }
 0x359   : > { %2325 = vmatmul.mubr.bf16.vlgmr.msra.gmra.mrb[8].mxu1 %v4994_v36 }
 0x35a   : > { %2334 = vmatpush1.bf16.msra.mxu1 %v3463_v45  ;;  %2365 = vmatprep.mubr.bf16.mxu1 %v4992_v35  ;;  %v3496_v35 = vcombine.high %v1477_v55, %v1481_v56  ;;  %v1433_v45 = vld [vmem:[#allocation2 + $0x8] sm:$0xff] }
 0x35b   : > { %2335 = vmatprep.subr.bf16.mxu1 %v3472_v46 }
 0x35e   : > { %2336 = vmatpush1.bf16.msra.mxu1 %v3471_v49 }
 0x35f   : > { %2337 = vmatprep.subr.bf16.mxu1 %v3480_v50 }
 0x362   : > { %2338 = vmatpush1.bf16.msra.mxu1 %v3479_v53  ;;  %v1435_v53 = vld [vmem:[#allocation2 + $0x18] sm:$0xff] }
 0x363   : > { %2339 = vmatprep.subr.bf16.mxu1 %v3488_v54 }
 0x366   : > { %2340 = vmatpush1.bf16.msra.mxu1 %v3487_v57 }
 0x367   : > { %2341 = vmatprep.subr.bf16.mxu1 %v3496_v35 }
 0x36a   : > { %2342 = vmatpush1.bf16.msra.mxu1 %v3495_v60 }
 0x36b   : > { %2343 = vmatprep.subr.bf16.mxu1 %v3504_v61 }
 0x36e   : > { %2344 = vmatpush1.bf16.msra.mxu1 %v3503_v0 }
 0x36f   : > { %2345 = vmatprep.subr.bf16.mxu1 %v3512_v1 }
 0x372   : > { %2346 = vmatpush1.bf16.msra.mxu1 %v3511_v4 }
 0x373   : > { %2347 = vmatprep.subr.bf16.mxu1 %v3520_v5 }
 0x376   : > { %2348 = vmatpush1.bf16.msra.mxu1 %v3519_v9 }
 0x377   : > { %2349 = vmatprep.subr.bf16.mxu1 %v3528_v10 }
 0x37a   : > { %2350 = vmatpush1.bf16.msra.mxu1 %v3527_v13  ;;  %v4083_v13 = vld [vmem:[#allocation12] sm:$0xff] (!%p3585_p7)  }
 0x37b   : > { %2351 = vmatprep.subr.bf16.mxu1 %v3536_v14  ;;  %v4084_v14 = vld [vmem:[#allocation12 + $0x80] sm:$0xff] (!%p3585_p7)   ;;  %3660 = vmatpush3.bf16.msra.mxu0 (!%p3585_p7), %v4083_v13  ;;  %v4127_v13 = vld [vmem:[#allocation12 + $0x118] sm:$0xff] (!%p3585_p7)  }
 0x37c   : > { %3661 = vmatprep.subr.bf16.mxu0 (!%p3585_p7), %v4085_v15  ;;  %v4129_v15 = vld [vmem:[#allocation12 + $0x160] sm:$0xff] (!%p3585_p7)  }
 0x37e   : > { %2352 = vmatpush1.bf16.msra.mxu1 %v3535_v17  ;;  %v4087_v17 = vld [vmem:[#allocation12 + $0x8] sm:$0xff] (!%p3585_p7)  }
 0x37f   : > { %2353 = vmatprep.subr.bf16.mxu1 %v3544_v18  ;;  %v4088_v18 = vld [vmem:[#allocation12 + $0x88] sm:$0xff] (!%p3585_p7)   ;;  %3662 = vmatpush3.bf16.msra.mxu0 (!%p3585_p7), %v4087_v17  ;;  %v4131_v17 = vld [vmem:[#allocation12 + $0x120] sm:$0xff] (!%p3585_p7)  }
 0x380   : > { %3663 = vmatprep.subr.bf16.mxu0 (!%p3585_p7), %v4089_v21  ;;  %v4133_v21 = vld [vmem:[#allocation12 + $0x168] sm:$0xff] (!%p3585_p7)  }
 0x382   : > { %2354 = vmatpush1.bf16.msra.mxu1 %v3543_v24  ;;  %v4091_v24 = vld [vmem:[#allocation12 + $0x10] sm:$0xff] (!%p3585_p7)  }
 0x383   : > { %2355 = vmatprep.subr.bf16.mxu1 %v3552_v25  ;;  %v4092_v25 = vld [vmem:[#allocation12 + $0x90] sm:$0xff] (!%p3585_p7)   ;;  %3664 = vmatpush3.bf16.msra.mxu0 (!%p3585_p7), %v4091_v24  ;;  %v4135_v24 = vld [vmem:[#allocation12 + $0x128] sm:$0xff] (!%p3585_p7)  }
 0x384   : > { %3665 = vmatprep.subr.bf16.mxu0 (!%p3585_p7), %v4093_v26  ;;  %v4136_v26 = vld [vmem:[#allocation12 + $0x1a8] sm:$0xff] (!%p3585_p7)  }
 0x386   : > { %2356 = vmatpush1.bf16.msra.mxu1 %v3551_v28  ;;  %v4095_v28 = vld [vmem:[#allocation12 + $0x18] sm:$0xff] (!%p3585_p7)  }
 0x387   : > { %2357 = vmatprep.subr.bf16.mxu1 %v3560_v29  ;;  %v4096_v29 = vld [vmem:[#allocation12 + $0x98] sm:$0xff] (!%p3585_p7)   ;;  %3666 = vmatpush3.bf16.msra.mxu0 (!%p3585_p7), %v4095_v28  ;;  %v4137_v28 = vld [vmem:[#allocation12 + $0x170] sm:$0xff] (!%p3585_p7)  }
 0x388   : > { %3667 = vmatprep.subr.bf16.mxu0 (!%p3585_p7), %v4097_v30  ;;  %v4138_v30 = vld [vmem:[#allocation12 + $0x1f0] sm:$0xff] (!%p3585_p7)  }
 0x38a   : > { %2358 = vmatpush1.bf16.msra.mxu1 %v3559_v32  ;;  %v4099_v32 = vld [vmem:[#allocation12 + $0x20] sm:$0xff] (!%p3585_p7)  }
 0x38b   : > { %2359 = vmatprep.subr.bf16.mxu1 %v3568_v33  ;;  %v4100_v33 = vld [vmem:[#allocation12 + $0xa0] sm:$0xff] (!%p3585_p7)   ;;  %3668 = vmatpush3.bf16.msra.mxu0 (!%p3585_p7), %v4099_v32  ;;  %v4139_v32 = vld [vmem:[#allocation12 + $0x130] sm:$0xff] (!%p3585_p7)  }
 0x38c   : > { %3669 = vmatprep.subr.bf16.mxu0 (!%p3585_p7), %v4101_v34  ;;  %v4141_v34 = vld [vmem:[#allocation12 + $0x178] sm:$0xff] (!%p3585_p7)  }
 0x38e   : > { %2360 = vmatpush1.bf16.msra.mxu1 %v3567_v38  ;;  %v4103_v38 = vld [vmem:[#allocation12 + $0x28] sm:$0xff] (!%p3585_p7)  }
 0x38f   : > { %2361 = vmatprep.subr.bf16.mxu1 %v3576_v39  ;;  %v4104_v39 = vld [vmem:[#allocation12 + $0xa8] sm:$0xff] (!%p3585_p7)   ;;  %3670 = vmatpush3.bf16.msra.mxu0 (!%p3585_p7), %v4103_v38  ;;  %v4142_v38 = vld [vmem:[#allocation12 + $0x1f8] sm:$0xff] (!%p3585_p7)  }
 0x390   : > { %3671 = vmatprep.subr.bf16.mxu0 (!%p3585_p7), %v4105_v40 }
 0x392   : > { %2362 = vmatpush1.bf16.msra.mxu1 %v3575_v7  ;;  %v4107_v7 = vld [vmem:[#allocation12 + $0x30] sm:$0xff] (!%p3585_p7)  }
 0x393   : > { %2363 = vmatprep.subr.bf16.mxu1 %v3584_v42  ;;  %v4108_v42 = vld [vmem:[#allocation12 + $0xb0] sm:$0xff] (!%p3585_p7)   ;;  %3672 = vmatpush3.bf16.msra.mxu0 (!%p3585_p7), %v4107_v7  ;;  %v4143_v7 = vld [vmem:[#allocation12 + $0x138] sm:$0xff] (!%p3585_p7)  }
 0x396   : > { %2364 = vmatpush1.bf16.msra.mxu1 %v3583_v43  ;;  %v4109_v43 = vld [vmem:[#allocation12 + $0x78] sm:$0xff] (!%p3585_p7)  }
 0x397   : > { %3681 = vmatprep.subr.bf16.mxu1 (!%p3585_p7), %v4082_v12  ;;  %3673 = vmatprep.subr.bf16.mxu0 (!%p3585_p7), %v4109_v43  ;;  %v4126_v12 = vld [vmem:[#allocation12 + $0x1d8] sm:$0xff] (!%p3585_p7)  }
 0x399   : > { %2366 = vmatmul.mubr.bf16.vlgmr.msra.gmra.mrb[12].mxu1 %v4994_v36  ;;  %v1436_v36 = vld [vmem:[#allocation2 + $0x20] sm:$0xff] }
 0x39a   : > { %3682 = vmatpush3.bf16.msra.mxu1 (!%p3585_p7), %v4084_v14  ;;  %v4128_v14 = vld [vmem:[#allocation12 + $0x198] sm:$0xff] (!%p3585_p7)  }
 0x39b   : > { %3683 = vmatprep.subr.bf16.mxu1 (!%p3585_p7), %v4086_v16  ;;  %v4130_v16 = vld [vmem:[#allocation12 + $0x1e0] sm:$0xff] (!%p3585_p7)  }
 0x39e   : > { %3684 = vmatpush3.bf16.msra.mxu1 (!%p3585_p7), %v4088_v18  ;;  %v4132_v18 = vld [vmem:[#allocation12 + $0x1a0] sm:$0xff] (!%p3585_p7)  }
 0x39f   : > { %3685 = vmatprep.subr.bf16.mxu1 (!%p3585_p7), %v4090_v23  ;;  %v4134_v23 = vld [vmem:[#allocation12 + $0x1e8] sm:$0xff] (!%p3585_p7)  }
 0x3a2   : > { %3686 = vmatpush3.bf16.msra.mxu1 (!%p3585_p7), %v4092_v25  ;;  %v2426_v25 = vsub.s32 (!%p3585_p7), 5, %v4980_v19 }
 0x3a3   : > { %3687 = vmatprep.subr.bf16.mxu1 (!%p3585_p7), %v4094_v27  ;;  %v2434_v27 = vsub.s32 (!%p3585_p7), 7, %v4980_v19 }
 0x3a6   : > { %3688 = vmatpush3.bf16.msra.mxu1 (!%p3585_p7), %v4096_v29  ;;  %v2422_v29 = vsub.s32 (!%p3585_p7), 4, %v4980_v19 }
 0x3a7   : > { %3689 = vmatprep.subr.bf16.mxu1 (!%p3585_p7), %v4098_v31  ;;  %v2430_v31 = vsub.s32 (!%p3585_p7), 6, %v4980_v19 }
 0x3aa   : > { %3690 = vmatpush3.bf16.msra.mxu1 (!%p3585_p7), %v4100_v33  ;;  %v4140_v33 = vld [vmem:[#allocation12 + $0x1b0] sm:$0xff] (!%p3585_p7)  }
 0x3ab   : > { %3691 = vmatprep.subr.bf16.mxu1 (!%p3585_p7), %v4102_v37 }
 0x3ac   : > { %v2244_v46 = vpop.f32.mrb[0].mxu1 }
 0x3ad   : > { %v2374_v47 = vadd.f32 %v2244_v46, %v1432_v44  ;;  %v2246_v48 = vpop.f32.mrb[1].mxu1  ;;  %v2418_v44 = vsub.s32 (!%p3585_p7), 3, %v4980_v19  ;;  %v2414_v46 = vsub.s32 (!%p3585_p7), 2, %v4980_v19  ;;  %v4144_v19 = vld [vmem:[#allocation12 + $0x1b8] sm:$0xff] (!%p3585_p7)  }
 0x3ae   : > { %v2375_v49 = vadd.f32 %v2246_v48, %v1433_v45  ;;  %v2248_v50 = vpop.f32.mrb[2].mxu1  ;;  %3692 = vmatpush3.bf16.msra.mxu1 (!%p3585_p7), %v4104_v39  ;;  %v4110_v45 = vld [vmem:[#allocation12 + $0xf8] sm:$0xff] (!%p3585_p7)  }
 0x3af   : > { %2382 = vst [vmem:[#allocation2] sm:$0xff] %v2374_v47  ;;  %v2249_v51 = vpop.f32.mrb[3].mxu1  ;;  %3693 = vmatprep.subr.bf16.mxu1 (!%p3585_p7), %v4106_v41  ;;  %v4111_v47 = vld [vmem:[#allocation12 + $0x38] sm:$0xff] (!%p3585_p7)  }
 0x3b0   : > { %2383 = vst [vmem:[#allocation2 + $0x8] sm:$0xff] %v2375_v49  ;;  %v4112_v48 = vld [vmem:[#allocation12 + $0xb8] sm:$0xff] (!%p3585_p7)   ;;  %3674 = vmatpush3.bf16.msra.mxu0 (!%p3585_p7), %v4111_v47 }
 0x3b1   : > { %v5099_v50 = vld [vmem:[#allocation11] sm:$0xff] (!%p3585_p7) }
 0x3b2   : > { %3694 = vmatpush3.bf16.msra.mxu1 (!%p3585_p7), %v4108_v42  ;;  %v2427_v37 = vrot.slane (!%p3585_p7), %v5099_v50, %v2426_v25  ;;  %v2435_v39 = vrot.slane (!%p3585_p7), %v5099_v50, %v2434_v27  ;;  %v2423_v40 = vrot.slane (!%p3585_p7), %v5099_v50, %v2422_v29  ;;  %v2431_v41 = vrot.slane (!%p3585_p7), %v5099_v50, %v2430_v31 }
 0x3b3   : > { %3695 = vmatprep.subr.bf16.mxu1 (!%p3585_p7), %v4110_v45 }
 0x3b6   : > { %3696 = vmatpush3.bf16.msra.mxu1 (!%p3585_p7), %v4112_v48 }
 0x3b7   : > { %v2395_v49 = vld [vmem:[#allocation2 + $0x8] sm:$0xff] (!%p3585_p7) }
 0x3ec   : > { %v2285_v54 = vpop.f32.mrb[4].mxu1 }
 0x3ed   : > { %v2376_v55 = vadd.f32 %v2285_v54, %v1434_v52  ;;  %v2287_v56 = vpop.f32.mrb[5].mxu1  ;;  %v2411_v52 = vrot.slane (!%p3585_p7), %v5099_v50, %v594_v22  ;;  %v2394_v54 = vld [vmem:[#allocation2] sm:$0xff] (!%p3585_p7) }
 0x3ee   : > { %v2377_v57 = vadd.f32 %v2287_v56, %v1435_v53  ;;  %v2289_v35 = vpop.f32.mrb[6].mxu1  ;;  %v2419_v53 = vrot.slane (!%p3585_p7), %v5099_v50, %v2418_v44 }
 0x3ef   : > { %2384 = vst [vmem:[#allocation2 + $0x10] sm:$0xff] %v2376_v55  ;;  %v2290_v58 = vpop.f32.mrb[7].mxu1  ;;  %v2407_v55 = vrot.slane (!%p3585_p7), %v5099_v50, %v590_v20  ;;  %v4113_v35 = vld [vmem:[#allocation12 + $0x140] sm:$0xff] (!%p3585_p7)   ;;  %v4118_v20 = vld [vmem:[#allocation12 + $0x1c8] sm:$0xff] (!%p3585_p7)  }
 0x3f0   : > { %2385 = vst [vmem:[#allocation2 + $0x18] sm:$0xff] %v2377_v57  ;;  %v2415_v57 = vrot.slane (!%p3585_p7), %v5099_v50, %v2414_v46  ;;  %v2445_v58 = vadd.f32 (!%p3585_p7), %v2411_v52, %v2395_v49  ;;  %3703 = vmatprep.subr.bf16.mxu0 (!%p3585_p7), %v4113_v35 }
 0x3f6   : > { %v2396_v56 = vld [vmem:[#allocation2 + $0x10] sm:$0xff] (!%p3585_p7) }
 0x3f7   : > { %v2397_v51 = vld [vmem:[#allocation2 + $0x18] sm:$0xff] (!%p3585_p7) }
 0x42c   : > { %v2326_v60 = vpop.f32.mrb[8].mxu1 }
 0x42d   : > { %v2378_v61 = vadd.f32 %v2326_v60, %v1436_v36  ;;  %v2328_v62 = vpop.f32.mrb[9].mxu1  ;;  %v2447_v36 = vadd.f32 (!%p3585_p7), %v2419_v53, %v2397_v51  ;;  %v2446_v60 = vadd.f32 (!%p3585_p7), %v2415_v57, %v2396_v56  ;;  %v3586_v56 = vld [vmem:[#allocation14] ss:$0 sm:$0xff] (!%p3585_p7) }
 0x42e   : > { %v2379_v63 = vadd.f32 %v2328_v62, %v1437_v59  ;;  %v2330_v0 = vpop.f32.mrb[10].mxu1  ;;  %v2444_v59 = vadd.f32 (!%p3585_p7), %v2407_v55, %v2394_v54  ;;  %v4115_v62 = vld [vmem:[#allocation12 + $0x100] sm:$0xff] (!%p3585_p7)  }
 0x42f   : > { %2386 = vst [vmem:[#allocation2 + $0x20] sm:$0xff] %v2378_v61  ;;  %v2331_v1 = vpop.f32.mrb[11].mxu1  ;;  %v4114_v61 = vld [vmem:[#allocation12 + $0x1c0] sm:$0xff] (!%p3585_p7)   ;;  %v2455_v22 = vpack.c.bf16 (!%p3585_p7), %v2447_v36, %v2447_v36 }
 0x430   : > { %2387 = vst [vmem:[#allocation2 + $0x28] sm:$0xff] %v2379_v63  ;;  %v2453_v63 = vpack.c.bf16 (!%p3585_p7), %v2445_v58, %v2445_v58  ;;  %v2452_v0 = vpack.c.bf16 (!%p3585_p7), %v2444_v59, %v2444_v59  ;;  %v2454_v1 = vpack.c.bf16 (!%p3585_p7), %v2446_v60, %v2446_v60  ;;  %3725 = vmatprep.subr.bf16.mxu1 (!%p3585_p7), %v4114_v61 }
 0x431   : > { %3051 = vmatprep.mubr.bf16.mxu1 (!%p3585_p7), %v2455_v22 }
 0x432   : > { %3011 = vmatprep.mubr.bf16.mxu0 (!%p3585_p7), %v2453_v63  ;;  %3052 = vmatmul.mubr.bf16.vlgmr.msra.gmra.mrb[0].mxu1 (!%p3585_p7), %v2454_v1 }
 0x433   : > { %3012 = vmatmul.mubr.bf16.vlgmr.msra.gmra.mrb[0].mxu0 (!%p3585_p7), %v2452_v0 }
 0x434   : > { %3704 = vmatpush3.bf16.msra.mxu0 (!%p3585_p7), %v4115_v62 }
 0x436   : > { %v2398_v45 = vld [vmem:[#allocation2 + $0x20] sm:$0xff] (!%p3585_p7) }
 0x437   : > { %v2399_v42 = vld [vmem:[#allocation2 + $0x28] sm:$0xff] (!%p3585_p7)  ;;  %v2448_v48 = vadd.f32 (!%p3585_p7), %v2423_v40, %v2398_v45 }
 0x438   : > { %v2449_v43 = vadd.f32 (!%p3585_p7), %v2427_v37, %v2399_v42 }
 0x439   : > { %v2456_v53 = vpack.c.bf16 (!%p3585_p7), %v2448_v48, %v2448_v48 }
 0x43a   : > { %v2457_v51 = vpack.c.bf16 (!%p3585_p7), %v2449_v43, %v2449_v43 }
 0x43c   : > { %3091 = vmatprep.mubr.bf16.mxu0 (!%p3585_p7), %v2457_v51 }
 0x46a   : > { %2393 = sbr.rel (%p3585_p7) target bundleno = 1383 (0x567), region = 84 }
 0x46c   : > { %v2367_v4 = vpop.f32.mrb[12].mxu1 }
 0x46d   : > { %v2380_v5 = vadd.f32 %v2367_v4, %v1438_v2  ;;  %v2369_v6 = vpop.f32.mrb[13].mxu1  ;;  %v4116_v2 = vld [vmem:[#allocation12 + $0x180] sm:$0xff] (!%p3585_p7)   ;;  %v4119_v4 = vld [vmem:[#allocation12 + $0x108] sm:$0xff] (!%p3585_p7)  }
 0x46e   : > { %v2381_v8 = vadd.f32 %v2369_v6, %v1439_v3  ;;  %v2371_v9 = vpop.f32.mrb[14].mxu1  ;;  %v4117_v3 = vld [vmem:[#allocation12 + $0x148] sm:$0xff] (!%p3585_p7)   ;;  %3726 = vmatpush3.bf16.msra.mxu1 (!%p3585_p7), %v4116_v2  ;;  %v4121_v6 = vld [vmem:[#allocation12 + $0x150] sm:$0xff] (!%p3585_p7)  }
 0x46f   : > { %2388 = vst [vmem:[#allocation2 + $0x30] sm:$0xff] %v2380_v5  ;;  %v2372_v10 = vpop.f32.mrb[15].mxu1  ;;  %v4120_v5 = vld [vmem:[#allocation12 + $0x188] sm:$0xff] (!%p3585_p7)   ;;  %3705 = vmatprep.subr.bf16.mxu0 (!%p3585_p7), %v4117_v3  ;;  %3727 = vmatprep.subr.bf16.mxu1 (!%p3585_p7), %v4118_v20  ;;  %v4123_v9 = vld [vmem:[#allocation12 + $0x110] sm:$0xff] (!%p3585_p7)  }
 0x470   : > { %2389 = vst [vmem:[#allocation2 + $0x38] sm:$0xff] %v2381_v8  ;;  %v4122_v8 = vld [vmem:[#allocation12 + $0x1d0] sm:$0xff] (!%p3585_p7)   ;;  %3706 = vmatpush3.bf16.msra.mxu0 (!%p3585_p7), %v4119_v4 }
 0x471   : > { %v4124_v10 = vld [vmem:[#allocation12 + $0x190] sm:$0xff]   ;;  %3707 = vmatprep.subr.bf16.mxu0 %v4121_v6 }
 0x472   : > { %3728 = vmatpush3.bf16.msra.mxu1 %v4120_v5 }
 0x473   : > { %3729 = vmatprep.subr.bf16.mxu1 %v4122_v8 }
 0x474   : > { %3708 = vmatpush3.bf16.msra.mxu0 %v4123_v9 }
 0x475   : > { %3709 = vmatprep.subr.bf16.mxu0 %v4125_v11 }
 0x476   : > { %3730 = vmatpush3.bf16.msra.mxu1 %v4124_v10  ;;  %v2400_v46 = vld [vmem:[#allocation2 + $0x30] sm:$0xff] }
 0x477   : > { %3731 = vmatprep.subr.bf16.mxu1 %v4126_v12  ;;  %v2401_v44 = vld [vmem:[#allocation2 + $0x38] sm:$0xff]  ;;  %v2450_v49 = vadd.f32 %v2431_v41, %v2400_v46 }
 0x478   : > { %3710 = vmatpush3.bf16.msra.mxu0 %v4127_v13  ;;  %v2451_v47 = vadd.f32 %v2435_v39, %v2401_v44 }
 0x479   : > { %3711 = vmatprep.subr.bf16.mxu0 %v4129_v15  ;;  %v2458_v50 = vpack.c.bf16 %v2450_v49, %v2450_v49 }
 0x47a   : > { %3732 = vmatpush3.bf16.msra.mxu1 %v4128_v14  ;;  %v2459_v52 = vpack.c.bf16 %v2451_v47, %v2451_v47 }
 0x47b   : > { %3733 = vmatprep.subr.bf16.mxu1 %v4130_v16 }
 0x47c   : > { %3712 = vmatpush3.bf16.msra.mxu0 %v4131_v17  ;;  %3131 = vmatprep.mubr.bf16.mxu1 %v2459_v52 }
 0x47d   : > { %3713 = vmatprep.subr.bf16.mxu0 %v4133_v21 }
 0x47e   : > { %3734 = vmatpush3.bf16.msra.mxu1 %v4132_v18 }
 0x47f   : > { %3735 = vmatprep.subr.bf16.mxu1 %v4134_v23 }
 0x480   : > { %3714 = vmatpush3.bf16.msra.mxu0 %v4135_v24 }
 0x481   : > { %3715 = vmatprep.subr.bf16.mxu0 %v4137_v28 }
 0x482   : > { %3736 = vmatpush3.bf16.msra.mxu1 %v4136_v26 }
 0x483   : > { %3737 = vmatprep.subr.bf16.mxu1 %v4138_v30 }
 0x484   : > { %3716 = vmatpush3.bf16.msra.mxu0 %v4139_v32 }
 0x485   : > { %3717 = vmatprep.subr.bf16.mxu0 %v4141_v34 }
 0x486   : > { %3738 = vmatpush3.bf16.msra.mxu1 %v4140_v33 }
 0x487   : > { %3739 = vmatprep.subr.bf16.mxu1 %v4142_v38 }
 0x488   : > { %3718 = vmatpush3.bf16.msra.mxu0 %v4143_v7 }
 0x48a   : > { %3740 = vmatpush3.bf16.msra.mxu1 %v4144_v19 }
 0x48b   : > { %3092 = vmatmul.mubr.bf16.vlgmr.msra.gmra.mrb[4].mxu0 %v2456_v53 }
 0x48d   : > { %3132 = vmatmul.mubr.bf16.vlgmr.msra.gmra.mrb[4].mxu1 %v2458_v50 }
 0x505   : > { %v3697_v55 = vpop.f32.mrb[0].mxu1 }
 0x506   : > { %v3675_v54 = vpop.f32.mrb[0].mxu0  ;;  %v3698_v35 = vpop.f32.mrb[1].mxu1 }
 0x507   : > { %v3676_v57 = vpop.f32.mrb[1].mxu0  ;;  %v3699_v36 = vadd.f32 %v3698_v35, %v3697_v55  ;;  %v3700_v60 = vpop.f32.mrb[2].mxu1 }
 0x508   : > { %v3677_v58 = vadd.f32 %v3676_v57, %v3675_v54  ;;  %v3678_v59 = vpop.f32.mrb[2].mxu0  ;;  %v3701_v62 = vpop.f32.mrb[3].mxu1 }
 0x509   : > { %v3679_v61 = vpop.f32.mrb[3].mxu0 }
 0x50a   : > { %v3014_v63 = vadd.f32 %v3677_v58, %v3586_v56 }
 0x50c   : > { %v3054_v22 = vadd.f32 %v3699_v36, %v3014_v63 }
 0x55e   : > { %v3719_v0 = vpop.f32.mrb[4].mxu0 }
 0x55f   : > { %v3720_v2 = vpop.f32.mrb[5].mxu0 }
 0x560   : > { %v3741_v1 = vpop.f32.mrb[4].mxu1  ;;  %v3721_v20 = vadd.f32 %v3720_v2, %v3719_v0  ;;  %v3722_v5 = vpop.f32.mrb[6].mxu0 }
 0x561   : > { %v3742_v3 = vpop.f32.mrb[5].mxu1  ;;  %v3723_v8 = vpop.f32.mrb[7].mxu0 }
 0x562   : > { %v3743_v4 = vadd.f32 %v3742_v3, %v3741_v1  ;;  %v3744_v6 = vpop.f32.mrb[6].mxu1  ;;  %v3094_v10 = vadd.f32 %v3721_v20, %v3054_v22 }
 0x563   : > { %v3745_v9 = vpop.f32.mrb[7].mxu1 }
 0x564   : > { %v3134_v11 = vadd.f32 %v3743_v4, %v3094_v10 }
 0x566   : > { %3139 = vst [vmem:[#allocation15] sm:$0xff] %v3134_v11 }
 0x567 PF: > { %p3819_p12 = scmp.eq.s32.totalorder %s4529_s30, 3  ;;  %s4459_s15 = smov [#allocation15]  }
 0x568   : > { %s3149_s20 = sshll.u32 %s4459_s15, 4  ;;  %s3150_s20 = int_to_ptr.vmem [resolvable:$true] %s3149_s20 }
 0x569   : > { %s4347_s23 = scalar_lea.vmem %s3150_s20, 128  ;;  %p4354_p9 = scmp.lt.s32.totalorder %s3150_s20, %s3150_s20 }
 0x56a   : > { %p4348_p1 = scmp.ne.s32.totalorder %s3150_s20, %s4347_s23  ;;  %p4355_p4 = scmp.lt.s32.totalorder %s4347_s23, %s4347_s23 }
 0x56c   : > { %p4349_p5 = pnand %p4348_p1, %p3819_p12  ;;  %p4356_p13 = por %p4355_p4, %p4354_p9 }
 0x56e   : > { %p4350_p11 = pneg %p4349_p5 }
 0x570   : > { %p4357_p2 = pnand %p4356_p13, %p4350_p11 }
 0x572   : > { %4360 = shalt.err (!%p4357_p2)
}
 0x573   : > { %s5220_s19 = sld [smem:[#allocation30_spill]] }
 0x579   : > { %s4361_s8 = scalar_lea.hbm %s5220_s19, 128 }
 0x57a   : > { %p4362_p10 = scmp.ne.s32.totalorder %s5220_s19, %s4361_s8  ;;  %p4367_p0 = scmp.lt.u32.totalorder %s4361_s8, %s5220_s19 }
 0x57c   : > { %p4363_p6 = pnand %p4362_p10, %p3819_p12 }
 0x57e   : > { %p4364_p8 = pneg %p4363_p6 }
 0x580   : > { %p4369_p3 = pnand %p4367_p0, %p4364_p8 }
 0x582   : > { %4372 = shalt.err (!%p4369_p3)
}
 0x583   : > { %3784 = dma.vmem_to_hbm [thread:$0]  (%p3819_p12), %s3150_s20, 128, %s5220_s19, [#allocation5]  }
 0x584   : > { %4418 = dma.done.wait (%p3819_p12), [#allocation5], 128  }
 0x585   : > { %4420 = vsyncadd (%p3819_p12), [#allocation5], 4294967168 }
 0x586 PF: > { %s26_s29 = sadd.s32 1, %s4443_s29   ;;  %s5221_s24 = sld [smem:[#allocation22_spill]] }
 0x587   : > { %p23_p7 = scmp.ge.s32.totalorder %s26_s29, 6   ;;  %s5222_s17 = sld [smem:[#allocation26_spill]] }
 0x588   : > { %s5223_s21 = sld [smem:[#allocation25_spill]]  ;;  %s5224_s25 = smov %s4431_s26 }
 0x589   : > { %s5226_s27 = smov %s4439_s28  ;;  %25 = sbr.rel (!%p23_p7) target bundleno = 14 (0xe), region = 136 }
 0x58d   : > { %s5225_s26 = smov %s5222_s17 }
 0x58e   : > { %s5227_s28 = smov %s5223_s21 }
 0x590   :  { %3162 = vsyncpa [#allocation4], 1 }
 0x591   :  { %3164 = vsyncpa [#allocation4 + $0x1], 1 }
 0x592   :  { %3165 = vsyncpa [#allocation7], 1 }
 0x593   :  { %3167 = vsyncpa [#allocation7 + $0x1], 1 }
 0x594   :  { %3168 = vsyncpa [#allocation10], 1 }
 0x595   :  { %3170 = vsyncpa [#allocation10 + $0x1], 1 }
 0x596   :  { %3171 = vsyncpa [#allocation13], 1 }
 0x597   :  { %3172 = vsyncpa [#allocation5], 1 }
 0x598   :  { %3174 = vsyncpa [#allocation5 + $0x1], 1 }

</bundles_post_ra>
